<compile_context>
chip_gen: v7x
topology: tpu7x:2x2x1
jax: 0.10.0
libtpu: 0.0.40
codegen_flags: <defaults>
</compile_context>

<pallas_src>
import functools

import numpy as np
import jax
import jax.numpy as jnp
from jax.experimental import pallas as pl
from jax.experimental.pallas import tpu as pltpu

OMEGA_0 = 30.0
_INV_SQRT2 = 1.0 / np.sqrt(2.0)


def _round_up(x, m):
    return (x + m - 1) // m * m


def _vmem_cap_bytes():
    """Per-generation clamp for vmem_limit_bytes (v7x only has 64 MiB VMEM)."""
    try:
        kind = jax.devices()[0].device_kind.lower()
    except Exception:
        kind = ""
    if "v7" in kind:
        return 48 * 1024 * 1024
    return 96 * 1024 * 1024


def _posnet_kernel(*refs, n_layers, skip_in):
    """One batch tile of the SIREN MLP in (features, TILE_N) layout.

    refs = (x_ref, w_0..w_L, b_0..b_L, o_ref) with L = n_layers (so
    n_layers + 1 SIREN layers).  omega_0 is pre-folded into W/b by the
    wrapper, so each layer is simply h = sin(W @ h + b).
    """
    num_layers_total = n_layers + 1
    x_ref = refs[0]                                             # (input_dim, TILE_N)
    w_refs = refs[1:1 + num_layers_total]                       # each (out_l, in_l)
    b_refs = refs[1 + num_layers_total:1 + 2 * num_layers_total]  # each (out_l, 1)
    o_ref = refs[-1]                                            # (1, TILE_N)

    h = x_ref[...]
    pending_skip = False            # previous layer ended in a skip-concat
    skip_at_end = False

    for l in range(num_layers_total):
        w = w_refs[l][...]
        b = b_refs[l][...]
        if pending_skip:
            # Conceptual layer input is cat([h, inp], features)/sqrt(2).  Split
            # the matmul instead of materializing the misaligned concat:
            #   y = (W[:, :H] @ h + W[:, H:] @ inp) / sqrt(2) + b.
            hx = h.shape[0]
            y = (jnp.dot(w[:, :hx], h, preferred_element_type=jnp.float32)
                 + jnp.dot(w[:, hx:], x_ref[...],
                           preferred_element_type=jnp.float32))
            y = y * np.float32(_INV_SQRT2) + b
            pending_skip = False
        else:
            y = jnp.dot(w, h, preferred_element_type=jnp.float32) + b
        # TODO(synk): optional bf16 sin on v6e/v7x (halves the dominant VALU/EUP
        # work); kept fp32 because SIREN with omega=30 is precision-sensitive.
        h = jnp.sin(y)
        if l in skip_in:
            if l < n_layers:
                pending_skip = True     # consumed by the next linear layer
            else:
                skip_at_end = True      # only consumer is the final mean

    # Final feature-mean on the MXU: ones(1, F) @ h -> lane-dense (1, TILE_N).
    f_h = h.shape[0]
    row_sum = jnp.dot(jnp.ones((1, f_h), jnp.float32), h,
                      preferred_element_type=jnp.float32)
    if skip_at_end:
        # mean(cat([h, inp], features)/sqrt(2)) folded analytically (no concat).
        inp = x_ref[...]
        row_sum = row_sum + jnp.dot(jnp.ones((1, inp.shape[0]), jnp.float32),
                                    inp, preferred_element_type=jnp.float32)
        mean = row_sum * np.float32(_INV_SQRT2 / (f_h + inp.shape[0]))
    else:
        mean = row_sum * np.float32(1.0 / f_h)

    o_ref[...] = mean.astype(o_ref.dtype)          # (1, TILE_N), unmasked store


def pos_network_forward(x, weights, biases, *, n_layers, skip_in, tile_n=8192):
    """x: (N, input_dim) fp32; weights[l]: (out, in); biases[l]: (out,).

    Returns (N,) fp32 (== PyTorch x.mean(dim=1)).
    """
    n, input_dim = x.shape

    # Fold omega_0 into the (tiny) parameters once; biases become (out, 1)
    # columns so they broadcast over the lane (batch) axis in-kernel.
    w_s = [(OMEGA_0 * w).astype(jnp.float32) for w in weights]
    b_s = [(OMEGA_0 * b.reshape(-1, 1)).astype(jnp.float32) for b in biases]

    # Batch tiling along lanes.  tile_n must be a multiple of 128; when the
    # batch allows it, keep >= 2 grid steps so ("parallel",) can shard across
    # both v7x TensorCores (no-op on v5e/v6e).
    n128 = _round_up(n, 128)
    tile_n = _round_up(max(128, min(int(tile_n), n128)), 128)
    if n128 >= 256 and _round_up(n, tile_n) // tile_n < 2:
        tile_n = _round_up(n128 // 2, 128)
    n_pad = _round_up(n, tile_n)
    num_tiles = n_pad // tile_n

    # Feature-on-sublane / batch-on-lane layout (layout plumbing in the wrapper).
    xt = jnp.pad(x.T, ((0, 0), (0, n_pad - n)))        # (input_dim, n_pad)

    kernel = functools.partial(_posnet_kernel, n_layers=n_layers,
                               skip_in=tuple(skip_in))

    x_spec = pl.BlockSpec((input_dim, tile_n), lambda i: (0, i))
    # Weights/biases: same (0, 0) block every grid step -> resident in VMEM.
    # TODO(synk): pipeline_mode=pl.Buffered(1) (or one packed parameter slab)
    # would drop their second buffer; negligible at these sizes.
    w_specs = [pl.BlockSpec(w.shape, lambda i: (0, 0)) for w in w_s]
    b_specs = [pl.BlockSpec(b.shape, lambda i: (0, 0)) for b in b_s]
    out_spec = pl.BlockSpec((1, tile_n), lambda i: (0, i))

    # Advisory cost estimate for XLA scheduling.
    param_elems = sum(int(w.size) for w in w_s) + sum(int(b.size) for b in b_s)
    flops = int(2 * n_pad * sum(int(w.shape[0]) * int(w.shape[1]) for w in w_s))
    transcendentals = int(n_pad * sum(int(w.shape[0]) for w in w_s))
    bytes_accessed = int(4 * (n_pad * (input_dim + 1) + param_elems))

    # VMEM budget from (8,128)-padded shapes: double-buffered x/out blocks,
    # ~4 live activation slabs, plus the (double-buffered, tiny) parameters.
    pad8 = lambda r: _round_up(max(int(r), 1), 8)
    pad128 = lambda c: _round_up(max(int(c), 1), 128)
    max_feat = max([input_dim] + [int(w.shape[0]) for w in w_s])
    param_bytes = 4 * (sum(pad8(w.shape[0]) * pad128(w.shape[1]) for w in w_s)
                       + sum(pad8(b.shape[0]) * pad128(b.shape[1]) for b in b_s))
    vmem_need = 4 * (2 * pad8(input_dim) * tile_n      # x block, double-buffered
                     + 2 * pad8(1) * tile_n            # out block, double-buffered
                     + 4 * pad8(max_feat) * tile_n)    # live activation slabs
    vmem_need += 2 * param_bytes
    vmem_limit = int(min(max(2 * vmem_need, 16 * 1024 * 1024), _vmem_cap_bytes()))

    out = pl.pallas_call(
        kernel,
        out_shape=jax.ShapeDtypeStruct((1, n_pad), jnp.float32),
        grid=(num_tiles,),
        in_specs=[x_spec] + w_specs + b_specs,
        out_specs=out_spec,
        compiler_params=pltpu.CompilerParams(
            dimension_semantics=("parallel",),
            vmem_limit_bytes=vmem_limit),
        cost_estimate=pl.CostEstimate(flops=flops,
                                      transcendentals=transcendentals,
                                      bytes_accessed=bytes_accessed),
    )(xt, *w_s, *b_s)
    return out[0, :n]


def init_params(key, input_dim, output_dim, hidden_dim, n_layers):
    """Deterministic SIREN init (matches the PyTorch __init__ distributions).

    Weights are kept in PyTorch nn.Linear layout: (out_features, in_features).
    """
    dims = [input_dim] + [hidden_dim] * n_layers + [output_dim]
    weights, biases = [], []
    for l in range(n_layers + 1):
        fan_in, fan_out = dims[l], dims[l + 1]
        key, kw, kb = jax.random.split(key, 3)
        wb = (1.0 / fan_in) if l == 0 else np.sqrt(6.0 / fan_in) / OMEGA_0
        w = jax.random.uniform(kw, (fan_out, fan_in), jnp.float32, -wb, wb)
        bb = 1.0 / np.sqrt(fan_in)      # torch nn.Linear default bias init
        b = jax.random.uniform(kb, (fan_out,), jnp.float32, -bb, bb)
        weights.append(w)
        biases.append(b)
    return weights, biases


def reference_forward(x, weights, biases, *, n_layers, skip_in):
    """Pure-JAX reference, literal transcription of the PyTorch forward."""
    inp = x
    for l in range(n_layers + 1):
        x = jnp.sin(OMEGA_0 * (x @ weights[l].T + biases[l]))
        if l in skip_in:
            x = jnp.concatenate([x, inp], axis=1) / np.sqrt(2.0)
    return x.mean(axis=1)


if __name__ == "__main__":
    # Default skip_in=(4,) means the skip fires at layer 4; pick n_layers=4 so
    # the skip lands on the last layer — the only configuration where the
    # PyTorch module's weight shapes are self-consistent.
    input_dim, output_dim, hidden_dim, n_layers = 4, 8, 32, 4
    skip_in = (4,)

    key = jax.random.PRNGKey(0)
    key, kx, kx2 = jax.random.split(key, 3)
    weights, biases = init_params(key, input_dim, output_dim, hidden_dim,
                                  n_layers)

    # Small, single-tile case.
    batch = 16
    x = jax.random.normal(kx, (batch, input_dim), jnp.float32)
    out = pos_network_forward(x, weights, biases,
                              n_layers=n_layers, skip_in=skip_in)
    out = jax.block_until_ready(out)
    ref = reference_forward(x, weights, biases,
                            n_layers=n_layers, skip_in=skip_in)
    np.testing.assert_allclose(np.asarray(out), np.asarray(ref),
                               rtol=5e-5, atol=5e-5)
    assert out.shape == (batch,)

    # Larger case exercising a multi-step grid (3 tiles of 128) + padded tail.
    batch2 = 300
    x2 = jax.random.normal(kx2, (batch2, input_dim), jnp.float32)
    out2 = pos_network_forward(x2, weights, biases,
                               n_layers=n_layers, skip_in=skip_in,
                               tile_n=128)
    out2 = jax.block_until_ready(out2)
    ref2 = reference_forward(x2, weights, biases,
                             n_layers=n_layers, skip_in=skip_in)
    np.testing.assert_allclose(np.asarray(out2), np.asarray(ref2),
                               rtol=5e-5, atol=5e-5)
    assert out2.shape == (batch2,)

    print("KERNEL_OK")
</pallas_src>

<mosaic_0001>
module attributes {stable_mosaic.version = 11 : i64} {
  func.func @_posnet_kernel(%arg0: i32, %arg1: memref<4x128xf32, #tpu.memory_space<vmem>>, %arg2: memref<32x4xf32, #tpu.memory_space<vmem>>, %arg3: memref<32x32xf32, #tpu.memory_space<vmem>>, %arg4: memref<32x32xf32, #tpu.memory_space<vmem>>, %arg5: memref<32x32xf32, #tpu.memory_space<vmem>>, %arg6: memref<8x32xf32, #tpu.memory_space<vmem>>, %arg7: memref<32x1xf32, #tpu.memory_space<vmem>>, %arg8: memref<32x1xf32, #tpu.memory_space<vmem>>, %arg9: memref<32x1xf32, #tpu.memory_space<vmem>>, %arg10: memref<32x1xf32, #tpu.memory_space<vmem>>, %arg11: memref<8x1xf32, #tpu.memory_space<vmem>>, %arg12: memref<1x128xf32, #tpu.memory_space<vmem>>) attributes {dimension_semantics = [#tpu.dimension_semantics<parallel>], iteration_bounds = array<i64: 1>, scalar_prefetch = 0 : i64, scratch_operands = 0 : i64, tpu.core_type = #tpu.core_type<tc>, window_params = [{transform_indices = @transform_0, window_bounds = array<i64: 4, 128>}, {pipeline_mode = #tpu.pipeline_mode<synchronous>, transform_indices = @transform_1, window_bounds = array<i64: 32, 4>}, {pipeline_mode = #tpu.pipeline_mode<synchronous>, transform_indices = @transform_2, window_bounds = array<i64: 32, 32>}, {pipeline_mode = #tpu.pipeline_mode<synchronous>, transform_indices = @transform_3, window_bounds = array<i64: 32, 32>}, {pipeline_mode = #tpu.pipeline_mode<synchronous>, transform_indices = @transform_4, window_bounds = array<i64: 32, 32>}, {pipeline_mode = #tpu.pipeline_mode<synchronous>, transform_indices = @transform_5, window_bounds = array<i64: 8, 32>}, {pipeline_mode = #tpu.pipeline_mode<synchronous>, transform_indices = @transform_6, window_bounds = array<i64: 32, 1>}, {pipeline_mode = #tpu.pipeline_mode<synchronous>, transform_indices = @transform_7, window_bounds = array<i64: 32, 1>}, {pipeline_mode = #tpu.pipeline_mode<synchronous>, transform_indices = @transform_8, window_bounds = array<i64: 32, 1>}, {pipeline_mode = #tpu.pipeline_mode<synchronous>, transform_indices = @transform_9, window_bounds = array<i64: 32, 1>}, {pipeline_mode = #tpu.pipeline_mode<synchronous>, transform_indices = @transform_10, window_bounds = array<i64: 8, 1>}, {transform_indices = @transform_11, window_bounds = array<i64: 1, 128>}]} {
    %c0 = arith.constant 0 : index
    %c0_0 = arith.constant 0 : index
    %0 = vector.load %arg1[%c0, %c0_0] : memref<4x128xf32, #tpu.memory_space<vmem>>, vector<4x128xf32>
    %c0_1 = arith.constant 0 : index
    %c0_2 = arith.constant 0 : index
    %1 = vector.load %arg2[%c0_1, %c0_2] : memref<32x4xf32, #tpu.memory_space<vmem>>, vector<32x4xf32>
    %c0_3 = arith.constant 0 : index
    %c0_4 = arith.constant 0 : index
    %2 = vector.load %arg7[%c0_3, %c0_4] : memref<32x1xf32, #tpu.memory_space<vmem>>, vector<32x1xf32>
    %cst = arith.constant dense<0.000000e+00> : vector<32x128xf32>
    %3 = tpu.matmul %1, %0, %cst {dimension_numbers = #tpu.dot_dimension_numbers<[1], [0], [0], [1], [0, 0, 1, 1], [], []>} : vector<32x4xf32>, vector<4x128xf32>, vector<32x128xf32> -> vector<32x128xf32>
    %4 = vector.broadcast %2 : vector<32x1xf32> to vector<32x128xf32>
    %5 = arith.addf %3, %4 : vector<32x128xf32>
    %6 = math.sin %5 : vector<32x128xf32>
    %c0_5 = arith.constant 0 : index
    %c0_6 = arith.constant 0 : index
    %7 = vector.load %arg3[%c0_5, %c0_6] : memref<32x32xf32, #tpu.memory_space<vmem>>, vector<32x32xf32>
    %c0_7 = arith.constant 0 : index
    %c0_8 = arith.constant 0 : index
    %8 = vector.load %arg8[%c0_7, %c0_8] : memref<32x1xf32, #tpu.memory_space<vmem>>, vector<32x1xf32>
    %cst_9 = arith.constant dense<0.000000e+00> : vector<32x128xf32>
    %9 = tpu.matmul %7, %6, %cst_9 {dimension_numbers = #tpu.dot_dimension_numbers<[1], [0], [0], [1], [0, 0, 1, 1], [], []>} : vector<32x32xf32>, vector<32x128xf32>, vector<32x128xf32> -> vector<32x128xf32>
    %10 = vector.broadcast %8 : vector<32x1xf32> to vector<32x128xf32>
    %11 = arith.addf %9, %10 : vector<32x128xf32>
    %12 = math.sin %11 : vector<32x128xf32>
    %c0_10 = arith.constant 0 : index
    %c0_11 = arith.constant 0 : index
    %13 = vector.load %arg4[%c0_10, %c0_11] : memref<32x32xf32, #tpu.memory_space<vmem>>, vector<32x32xf32>
    %c0_12 = arith.constant 0 : index
    %c0_13 = arith.constant 0 : index
    %14 = vector.load %arg9[%c0_12, %c0_13] : memref<32x1xf32, #tpu.memory_space<vmem>>, vector<32x1xf32>
    %cst_14 = arith.constant dense<0.000000e+00> : vector<32x128xf32>
    %15 = tpu.matmul %13, %12, %cst_14 {dimension_numbers = #tpu.dot_dimension_numbers<[1], [0], [0], [1], [0, 0, 1, 1], [], []>} : vector<32x32xf32>, vector<32x128xf32>, vector<32x128xf32> -> vector<32x128xf32>
    %16 = vector.broadcast %14 : vector<32x1xf32> to vector<32x128xf32>
    %17 = arith.addf %15, %16 : vector<32x128xf32>
    %18 = math.sin %17 : vector<32x128xf32>
    %c0_15 = arith.constant 0 : index
    %c0_16 = arith.constant 0 : index
    %19 = vector.load %arg5[%c0_15, %c0_16] : memref<32x32xf32, #tpu.memory_space<vmem>>, vector<32x32xf32>
    %c0_17 = arith.constant 0 : index
    %c0_18 = arith.constant 0 : index
    %20 = vector.load %arg10[%c0_17, %c0_18] : memref<32x1xf32, #tpu.memory_space<vmem>>, vector<32x1xf32>
    %cst_19 = arith.constant dense<0.000000e+00> : vector<32x128xf32>
    %21 = tpu.matmul %19, %18, %cst_19 {dimension_numbers = #tpu.dot_dimension_numbers<[1], [0], [0], [1], [0, 0, 1, 1], [], []>} : vector<32x32xf32>, vector<32x128xf32>, vector<32x128xf32> -> vector<32x128xf32>
    %22 = vector.broadcast %20 : vector<32x1xf32> to vector<32x128xf32>
    %23 = arith.addf %21, %22 : vector<32x128xf32>
    %24 = math.sin %23 : vector<32x128xf32>
    %c0_20 = arith.constant 0 : index
    %c0_21 = arith.constant 0 : index
    %25 = vector.load %arg6[%c0_20, %c0_21] : memref<8x32xf32, #tpu.memory_space<vmem>>, vector<8x32xf32>
    %c0_22 = arith.constant 0 : index
    %c0_23 = arith.constant 0 : index
    %26 = vector.load %arg11[%c0_22, %c0_23] : memref<8x1xf32, #tpu.memory_space<vmem>>, vector<8x1xf32>
    %cst_24 = arith.constant dense<0.000000e+00> : vector<8x128xf32>
    %27 = tpu.matmul %25, %24, %cst_24 {dimension_numbers = #tpu.dot_dimension_numbers<[1], [0], [0], [1], [0, 0, 1, 1], [], []>} : vector<8x32xf32>, vector<32x128xf32>, vector<8x128xf32> -> vector<8x128xf32>
    %28 = vector.broadcast %26 : vector<8x1xf32> to vector<8x128xf32>
    %29 = arith.addf %27, %28 : vector<8x128xf32>
    %30 = math.sin %29 : vector<8x128xf32>
    %cst_25 = arith.constant 1.000000e+00 : f32
    %31 = vector.broadcast %cst_25 : f32 to vector<1x8xf32>
    %cst_26 = arith.constant dense<0.000000e+00> : vector<1x128xf32>
    %32 = tpu.matmul %31, %30, %cst_26 {dimension_numbers = #tpu.dot_dimension_numbers<[1], [0], [0], [1], [0, 0, 1, 1], [], []>} : vector<1x8xf32>, vector<8x128xf32>, vector<1x128xf32> -> vector<1x128xf32>
    %c0_27 = arith.constant 0 : index
    %c0_28 = arith.constant 0 : index
    %33 = vector.load %arg1[%c0_27, %c0_28] : memref<4x128xf32, #tpu.memory_space<vmem>>, vector<4x128xf32>
    %cst_29 = arith.constant 1.000000e+00 : f32
    %34 = vector.broadcast %cst_29 : f32 to vector<1x4xf32>
    %cst_30 = arith.constant dense<0.000000e+00> : vector<1x128xf32>
    %35 = tpu.matmul %34, %33, %cst_30 {dimension_numbers = #tpu.dot_dimension_numbers<[1], [0], [0], [1], [0, 0, 1, 1], [], []>} : vector<1x4xf32>, vector<4x128xf32>, vector<1x128xf32> -> vector<1x128xf32>
    %36 = arith.addf %32, %35 : vector<1x128xf32>
    %cst_31 = arith.constant 0.0589255653 : f32
    %37 = vector.broadcast %cst_31 : f32 to vector<1x128xf32>
    %38 = arith.mulf %36, %37 : vector<1x128xf32>
    %c0_32 = arith.constant 0 : index
    %c0_33 = arith.constant 0 : index
    %39 = vector.load %arg12[%c0_32, %c0_33] : memref<1x128xf32, #tpu.memory_space<vmem>>, vector<1x128xf32>
    tpu.vector_store %arg12[%c0_32, %c0_33], %38 {strides = array<i32>} : memref<1x128xf32, #tpu.memory_space<vmem>>, vector<1x128xf32>,
    return
  }
  func.func @transform_0(%arg0: i32) -> (i32, i32) {
    %c0_i32 = arith.constant 0 : i32
    %c0_i32_0 = arith.constant 0 : i32
    return %c0_i32, %arg0 : i32, i32
  }
  func.func @transform_1(%arg0: i32) -> (i32, i32) {
    %c0_i32 = arith.constant 0 : i32
    %c0_i32_0 = arith.constant 0 : i32
    %c0_i32_1 = arith.constant 0 : i32
    return %c0_i32, %c0_i32_0 : i32, i32
  }
  func.func @transform_2(%arg0: i32) -> (i32, i32) {
    %c0_i32 = arith.constant 0 : i32
    %c0_i32_0 = arith.constant 0 : i32
    %c0_i32_1 = arith.constant 0 : i32
    return %c0_i32, %c0_i32_0 : i32, i32
  }
  func.func @transform_3(%arg0: i32) -> (i32, i32) {
    %c0_i32 = arith.constant 0 : i32
    %c0_i32_0 = arith.constant 0 : i32
    %c0_i32_1 = arith.constant 0 : i32
    return %c0_i32, %c0_i32_0 : i32, i32
  }
  func.func @transform_4(%arg0: i32) -> (i32, i32) {
    %c0_i32 = arith.constant 0 : i32
    %c0_i32_0 = arith.constant 0 : i32
    %c0_i32_1 = arith.constant 0 : i32
    return %c0_i32, %c0_i32_0 : i32, i32
  }
  func.func @transform_5(%arg0: i32) -> (i32, i32) {
    %c0_i32 = arith.constant 0 : i32
    %c0_i32_0 = arith.constant 0 : i32
    %c0_i32_1 = arith.constant 0 : i32
    return %c0_i32, %c0_i32_0 : i32, i32
  }
  func.func @transform_6(%arg0: i32) -> (i32, i32) {
    %c0_i32 = arith.constant 0 : i32
    %c0_i32_0 = arith.constant 0 : i32
    %c0_i32_1 = arith.constant 0 : i32
    return %c0_i32, %c0_i32_0 : i32, i32
  }
  func.func @transform_7(%arg0: i32) -> (i32, i32) {
    %c0_i32 = arith.constant 0 : i32
    %c0_i32_0 = arith.constant 0 : i32
    %c0_i32_1 = arith.constant 0 : i32
    return %c0_i32, %c0_i32_0 : i32, i32
  }
  func.func @transform_8(%arg0: i32) -> (i32, i32) {
    %c0_i32 = arith.constant 0 : i32
    %c0_i32_0 = arith.constant 0 : i32
    %c0_i32_1 = arith.constant 0 : i32
    return %c0_i32, %c0_i32_0 : i32, i32
  }
  func.func @transform_9(%arg0: i32) -> (i32, i32) {
    %c0_i32 = arith.constant 0 : i32
    %c0_i32_0 = arith.constant 0 : i32
    %c0_i32_1 = arith.constant 0 : i32
    return %c0_i32, %c0_i32_0 : i32, i32
  }
  func.func @transform_10(%arg0: i32) -> (i32, i32) {
    %c0_i32 = arith.constant 0 : i32
    %c0_i32_0 = arith.constant 0 : i32
    %c0_i32_1 = arith.constant 0 : i32
    return %c0_i32, %c0_i32_0 : i32, i32
  }
  func.func @transform_11(%arg0: i32) -> (i32, i32) {
    %c0_i32 = arith.constant 0 : i32
    %c0_i32_0 = arith.constant 0 : i32
    return %c0_i32, %arg0 : i32, i32
  }
}

</mosaic_0001>

<bundles_post_ra>
// kernel: tpu_custom_call.1
= control target key start
LH: loop header
LB: loop body
LE: loop exit
PB: predicated region body
PF: predicated region fallthrough
CT: control target
= control target key end

     0   :  { %vm81_vm0 = vcmask 1043456   ;;  %vm68_vm1 = vcmask 31744   ;;  %v2961_v5 = vmov 0   ;;  %s4368_s0 = inlined_call_operand.vmem [shape: f32[4,128], index: 0, kind: input, shape index: {}]   ;;  %s4369_s1 = inlined_call_operand.vmem [shape: f32[32,4], index: 1, kind: input, shape index: {}]   ;;  %s4370_s2 = inlined_call_operand.vmem [shape: f32[32,32], index: 2, kind: input, shape index: {}]   ;;  %s4371_s3 = inlined_call_operand.vmem [shape: f32[32,32], index: 3, kind: input, shape index: {}]   ;;  %s4372_s4 = inlined_call_operand.vmem [shape: f32[32,32], index: 4, kind: input, shape index: {}]   ;;  %s4373_s5 = inlined_call_operand.vmem [shape: f32[8,32], index: 5, kind: input, shape index: {}]   ;;  %s4374_s6 = inlined_call_operand.vmem [shape: f32[32,1], index: 6, kind: input, shape index: {}]   ;;  %s4375_s7 = inlined_call_operand.vmem [shape: f32[32,1], index: 7, kind: input, shape index: {}]   ;;  %s4376_s8 = inlined_call_operand.vmem [shape: f32[32,1], index: 8, kind: input, shape index: {}]   ;;  %s4377_s9 = inlined_call_operand.vmem [shape: f32[32,1], index: 9, kind: input, shape index: {}]   ;;  %s4378_s10 = inlined_call_operand.vmem [shape: f32[8,1], index: 10, kind: input, shape index: {}]   ;;  %s4379_s11 = inlined_call_operand.hbm [shape: f32[1,128], index: 11, kind: output, shape index: {}]  }
   0x1   :  { %v39_v0 = vld [vmem:[%s4368_s0] sm:$0xf]  ;;  %v41_v2 = vld [vmem:[%s4369_s1 + $0x8] sm:$0xff]  ;;  %v42_v3 = vld [vmem:[%s4369_s1 + $0x10] sm:$0xff]  ;;  %2866 = vset.pattern.permute.xlu0 %v2961_v5  ;;  %2867 = vset.pattern.permute.xlu1 %v2961_v5 }
   0x2   :  { %v40_v1 = vld [vmem:[%s4369_s1] sm:$0xff]  ;;  %2683 = vmatprep.subr.msk.mxu1 %vm81_vm0, %v39_v0  ;;  %v46_v6 = vld [vmem:[%s4374_s6 + $0x10] sm:$0xff]  ;;  %v43_v7 = vld [vmem:[%s4369_s1 + $0x18] sm:$0xff] }
   0x3   :  { %2685 = vmatprep.mubr.msk.f32.mxu1 %vm68_vm1, %v40_v1  ;;  %v44_v4 = vld [vmem:[%s4374_s6] sm:$0xff]  ;;  %2684 = vmatpush3.msk.msra.mxu1 %vm81_vm0, %v39_v0  ;;  %v45_v8 = vld [vmem:[%s4374_s6 + $0x8] sm:$0xff]  ;;  %v47_v9 = vld [vmem:[%s4374_s6 + $0x18] sm:$0xff] }
   0x4   :  { %2686 = vmatmul.mubr.msk.f32.vlgmr.msra.gmra.mrb[0].mxu1 %vm68_vm1, %v41_v2  ;;  %50 = vperm.xlu0 %2866, %v44_v4  }
   0x5   :  { %2688 = vmatprep.mubr.msk.f32.mxu1 %vm68_vm1, %v42_v3  ;;  %60 = vperm.xlu1 %2867, %v46_v6  }
   0x8   :  { %2689 = vmatmul.mubr.msk.f32.gmra.mrb[2].mxu1 %vm68_vm1, %v43_v7  ;;  %55 = vperm.xlu0 %2866, %v45_v8  }
   0x9   :  { %16 = vsyncpa [#allocation3], 0  ;;  %v590_v10 = vld [vmem:[%s4375_s7] sm:$0xff]  ;;  %65 = vperm.xlu1 %2867, %v47_v9   ;;  %v591_v11 = vld [vmem:[%s4375_s7 + $0x8] sm:$0xff]  ;;  %v2962_v1 = vmov 683565275  }
   0xa   :  { %v592_v12 = vld [vmem:[%s4375_s7 + $0x10] sm:$0xff]  ;;  %v593_v13 = vld [vmem:[%s4375_s7 + $0x18] sm:$0xff]  ;;  %v1132_v14 = vld [vmem:[%s4376_s8] sm:$0xff]  ;;  %v2963_v3 = vmov 2475754826   ;;  %vm614_vm14 = vcmask 261120  }
   0xb   :  { %v1133_v15 = vld [vmem:[%s4376_s8 + $0x8] sm:$0xff]  ;;  %v1134_v16 = vld [vmem:[%s4376_s8 + $0x10] sm:$0xff]  ;;  %v1135_v17 = vld [vmem:[%s4376_s8 + $0x18] sm:$0xff]  ;;  %v2964_v6 = vmov 2131351028  }
   0xc   :  { %596 = vperm.xlu0 %2866, %v590_v10   ;;  %v1673_v18 = vld [vmem:[%s4377_s9] sm:$0xff]  ;;  %v1674_v19 = vld [vmem:[%s4377_s9 + $0x8] sm:$0xff]  ;;  %v1675_v20 = vld [vmem:[%s4377_s9 + $0x10] sm:$0xff]  ;;  %v2965_v8 = vmov 2102212464  }
   0xd   :  { %601 = vperm.xlu1 %2867, %v591_v11   ;;  %v1676_v21 = vld [vmem:[%s4377_s9 + $0x18] sm:$0xff]  ;;  %v2211_v22 = vld [vmem:[%s4378_s10] sm:$0xff]  ;;  %v2966_v10 = vmov 920167782  }
  0x10   :  { %606 = vperm.xlu0 %2866, %v592_v12  }
  0x11   :  { %611 = vperm.xlu1 %2867, %v593_v13  }
  0x14   :  { %1138 = vperm.xlu0 %2866, %v1132_v14  }
  0x15   :  { %1143 = vperm.xlu1 %2867, %v1133_v15  }
  0x18   :  { %1148 = vperm.xlu0 %2866, %v1134_v16  }
  0x19   :  { %1153 = vperm.xlu1 %2867, %v1135_v17   ;;  %v2967_v17 = vmov 1326507024  }
  0x1c   :  { %1679 = vperm.xlu0 %2866, %v1673_v18  }
  0x1d   :  { %1684 = vperm.xlu1 %2867, %v1674_v19  }
  0x20   :  { %1689 = vperm.xlu0 %2866, %v1675_v20  }
  0x21   :  { %1694 = vperm.xlu1 %2867, %v1676_v21  }
  0x24   :  { %2214 = vperm.xlu0 %2866, %v2211_v22  }
  0x83   :  { %v51_v23 = vpop.permute.xlu0 %50 }
  0x84   :  { %v61_v24 = vpop.permute.xlu1 %60 }
  0x87   :  { %v56_v25 = vpop.permute.xlu0 %55 }
  0x88   :  { %v66_v32 = vpop.permute.xlu1 %65 }
  0xd7   :  { %v2687_v26 = vpop.f32.mrb[0].mxu1 }
  0xd8   :  { %v3105_v27 = vadd.f32 %v2687_v26, %v56_v25  ;;  %v151_v28 = vpop.f32.mrb[1].mxu1 }
  0xd9   :  { %v3107_v29 = vadd.f32 %v151_v28, %v51_v23 }
  0xda   :  { %v274_v30 = vand.u32 2147483647, %v3105_v27  ;;  %v277_v31 = vand.u32 2139095040, %v3105_v27 }
  0xdb   :  { %v170_v33 = vand.u32 2147483647, %v3107_v29  ;;  %v173_v34 = vand.u32 2139095040, %v3107_v29  ;;  %v2690_v35 = vpop.f32.mrb[2].mxu1 }
  0xdc   :  { %v278_v36 = vshrl.u32 %v277_v31, 23  ;;  %v281_v37 = vand.u32 8388607, %v274_v30  ;;  %v3115_v38 = vadd.f32 %v2690_v35, %v66_v32  ;;  %v161_v39 = vpop.f32.mrb[3].mxu1 }
  0xdd   :  { %v174_v40 = vshrl.u32 %v173_v34, 23  ;;  %v177_v41 = vand.u32 8388607, %v170_v33  ;;  %v3121_v46 = vadd.f32 %v161_v39, %v61_v24 }
  0xde   :  { %v2565_v42 = vadd.s32 4294967169, %v278_v36  ;;  %v482_v43 = vand.u32 2147483647, %v3115_v38  ;;  %v485_v45 = vand.u32 2139095040, %v3115_v38  ;;  %v282_v47 = vor.u32 8388608, %v281_v37 }
  0xdf   :  { %v2561_v44 = vadd.s32 4294967169, %v174_v40  ;;  %v178_v49 = vor.u32 8388608, %v177_v41  ;;  %v378_v55 = vand.u32 2147483647, %v3121_v46 }
  0xe0   :  { %v284_v48 = vadd.s32 1, %v2565_v42  ;;  %v486_v51 = vshrl.u32 %v485_v45, 23  ;;  %v3125_v52 = vand.u32 8388607, %v482_v43  ;;  %v3128_v58 = vshll.u32 %v282_v47, 8 }
  0xe1   :  { %v180_v50 = vadd.s32 1, %v2561_v44  ;;  %v3132_v62 = vshll.u32 %v178_v49, 8 }
  0xe2   :  { %vm285_vm2 = vcmp.gt.s32.totalorder %v284_v48, 0  ;;  %v2573_v54 = vadd.s32 4294967169, %v486_v51  ;;  %v490_v63 = vor.u32 8388608, %v3125_v52 }
  0xe3   :  { %v286_v53 = vsel %vm285_vm2, %v284_v48, 0  ;;  %vm181_vm3 = vcmp.gt.s32.totalorder %v180_v50, 0 }
  0xe4   :  { %v287_v56 = vshrl.u32 %v286_v53, 5  ;;  %v288_v57 = vand.u32 31, %v286_v53  ;;  %v182_v59 = vsel %vm181_vm3, %v180_v50, 0  ;;  %v3137_v5 = vadd.s32 1, %v2573_v54 }
  0xe5   :  { %v3130_v60 = vshrl.u32 %v182_v59, 5  ;;  %v184_v61 = vand.u32 31, %v182_v59 }
  0xe6   :  { %v289_v0 = vsub.s32 32, %v288_v57  ;;  %v291_v2 = vshll.u32 %v2962_v1, %v288_v57  ;;  %v294_v4 = vshll.u32 %v2963_v3, %v288_v57  ;;  %v297_v7 = vshll.u32 %v2964_v6, %v288_v57 }
  0xe7   :  { %v300_v9 = vshll.u32 %v2965_v8, %v288_v57  ;;  %v303_v11 = vshll.u32 %v2966_v10, %v288_v57  ;;  %vm306_vm4 = vcmp.lt.s32.totalorder %v287_v56, 1  ;;  %vm307_vm5 = vcmp.lt.s32.totalorder %v287_v56, 2 }
  0xe8   :  { %v292_v12 = vshrl.u32 %v2963_v3, %v289_v0  ;;  %v295_v13 = vshrl.u32 %v2964_v6, %v289_v0  ;;  %v298_v14 = vshrl.u32 %v2965_v8, %v289_v0  ;;  %v290_v15 = vshrl.u32 %v2962_v1, %v289_v0 }
  0xe9   :  { %v301_v16 = vshrl.u32 %v2966_v10, %v289_v0  ;;  %v304_v18 = vshrl.u32 %v2967_v17, %v289_v0  ;;  %vm308_vm6 = vcmp.lt.s32.totalorder %v287_v56, 3  ;;  %v185_v22 = vsub.s32 32, %v184_v61 }
  0xea   :  { %v293_v19 = vor.u32 %v292_v12, %v291_v2  ;;  %v296_v20 = vor.u32 %v295_v13, %v294_v4  ;;  %v299_v21 = vor.u32 %v298_v14, %v297_v7  ;;  %vm309_vm7 = vcmp.lt.s32.totalorder %v287_v56, 4 }
  0xeb   :  { %v302_v23 = vor.u32 %v301_v16, %v300_v9  ;;  %v305_v24 = vor.u32 %v304_v18, %v303_v11  ;;  %v187_v25 = vshll.u32 %v2962_v1, %v184_v61  ;;  %v190_v37 = vshll.u32 %v2963_v3, %v184_v61 }
  0xec   :  { %v310_v26 = vsel %vm306_vm4, %v290_v15, %v293_v19  ;;  %v311_v28 = vsel %vm309_vm7, %v299_v21, 2102212464  ;;  %v314_v31 = vsel %vm306_vm4, %v293_v19, %v296_v20  ;;  %v318_v32 = vsel %vm306_vm4, %v296_v20, %v299_v21 }
  0xed   :  { %v312_v34 = vsel %vm308_vm6, %v296_v20, %v311_v28  ;;  %v315_v35 = vsel %vm309_vm7, %v302_v23, 920167782  ;;  %v319_v36 = vsel %vm309_vm7, %v305_v24, 1326507024  ;;  %v186_v41 = vshrl.u32 %v2962_v1, %v185_v22 }
  0xee   :  { %v316_v39 = vsel %vm308_vm6, %v299_v21, %v315_v35  ;;  %v320_v40 = vsel %vm308_vm6, %v302_v23, %v319_v36  ;;  %v188_v42 = vshrl.u32 %v2963_v3, %v185_v22  ;;  %v313_v44 = vsel %vm307_vm5, %v310_v26, %v312_v34 }
  0xef   :  { %v317_v45 = vsel %vm307_vm5, %v314_v31, %v316_v39  ;;  %v321_v47 = vsel %vm307_vm5, %v318_v32, %v320_v40  ;;  %v191_v48 = vshrl.u32 %v2964_v6, %v185_v22  ;;  %v193_v59 = vshll.u32 %v2964_v6, %v184_v61  ;;  %v586_v40 = vld [vmem:[%s4370_s2] sm:$0xff] }
  0xf0   :  { %v3163_v49 = vmul.u32.u64.low %v3128_v58, %v321_v47  ;;  %v3164_v50 = vmul.u32.u64.high %v3128_v58, %v321_v47, %v3163_v49  ;;  %v3167_v51 = vmul.u32.u64.low %v3128_v58, %v317_v45  ;;  %v3168_v53 = vmul.u32.u64.high %v3128_v58, %v317_v45, %v3167_v51  ;;  %2699 = vmatprep.mubr.msk.f32.mxu1 %vm614_vm14, %v586_v40 }
  0xf1   :  { %v189_v54 = vor.u32 %v188_v42, %v187_v25  ;;  %v192_v57 = vor.u32 %v191_v48, %v190_v37  ;;  %v194_v0 = vshrl.u32 %v2965_v8, %v185_v22  ;;  %v329_v2 = vmul.u32 %v3128_v58, %v313_v44 }
  0xf2   :  { %v196_v56 = vshll.u32 %v2965_v8, %v184_v61  ;;  %v197_v4 = vshrl.u32 %v2966_v10, %v185_v22  ;;  %v200_v7 = vshrl.u32 %v2967_v17, %v185_v22  ;;  %v199_v11 = vshll.u32 %v2966_v10, %v184_v61 }
  0xf3   :  { %v195_v9 = vor.u32 %v194_v0, %v193_v59  ;;  %vm202_vm8 = vcmp.lt.s32.totalorder %v3130_v60, 1  ;;  %vm203_vm9 = vcmp.lt.s32.totalorder %v3130_v60, 2  ;;  %vm331_vm10 = vc.u32 %v3164_v50, %v3167_v51 }
  0xf4   :  { %v332_v12 = vadd.s32 1, %v3168_v53  ;;  %v198_v13 = vor.u32 %v197_v4, %v196_v56  ;;  %vm204_vm11 = vcmp.lt.s32.totalorder %v3130_v60, 3  ;;  %v201_v58 = vor.u32 %v200_v7, %v199_v11 }
  0xf5   :  { %vm205_vm12 = vcmp.lt.s32.totalorder %v3130_v60, 4  ;;  %v206_v14 = vsel %vm202_vm8, %v186_v41, %v189_v54  ;;  %v210_v15 = vsel %vm202_vm8, %v189_v54, %v192_v57  ;;  %v214_v19 = vsel %vm202_vm8, %v192_v57, %v195_v9 }
  0xf6   :  { %v333_v16 = vsel %vm331_vm10, %v332_v12, %v3168_v53  ;;  %v207_v18 = vsel %vm205_vm12, %v195_v9, 2102212464  ;;  %v211_v61 = vsel %vm205_vm12, %v198_v13, 920167782  ;;  %v215_v23 = vsel %vm205_vm12, %v201_v58, 1326507024 }
  0xf7   :  { %v334_v20 = vadd.s32 %v333_v16, %v329_v2  ;;  %v208_v21 = vsel %vm204_vm11, %v192_v57, %v207_v18  ;;  %v212_v22 = vsel %vm204_vm11, %v195_v9, %v211_v61  ;;  %v216_v25 = vsel %vm204_vm11, %v198_v13, %v215_v23 }
  0xf8   :  { %v213_v24 = vsel %vm203_vm9, %v210_v15, %v212_v22  ;;  %vm493_vm13 = vcmp.gt.s32.totalorder %v3137_v5, 0  ;;  %v381_v26 = vand.u32 2139095040, %v3121_v46  ;;  %v217_v31 = vsel %vm203_vm9, %v214_v19, %v216_v25 }
  0xf9   :  { %v335_v28 = vadd.s32 536870912, %v334_v20  ;;  %v3191_v32 = vmul.u32.u64.low %v3132_v62, %v213_v24  ;;  %v3192_v34 = vmul.u32.u64.high %v3132_v62, %v213_v24, %v3191_v32  ;;  %v209_v35 = vsel %vm203_vm9, %v206_v14, %v208_v21 }
  0xfa   :  { %v3198_v36 = vmul.u32.u64.low %v3132_v62, %v217_v31  ;;  %v3199_v37 = vmul.u32.u64.high %v3132_v62, %v217_v31, %v3198_v36  ;;  %v494_v39 = vsel %vm493_vm13, %v3137_v5, 0  ;;  %v3209_v44 = vand.u32 8388607, %v378_v55 }
  0xfb   :  { %v3205_v41 = vshrl.u32 %v335_v28, 30  ;;  %v496_v42 = vand.u32 31, %v494_v39  ;;  %v3212_v60 = vadd.s32 %v3167_v51, %v3164_v50  ;;  %v3216_v45 = vshll.u32 %v490_v63, 8 }
  0xfc   :  { %v382_v47 = vshrl.u32 %v381_v26, 23  ;;  %v225_v48 = vmul.u32 %v3132_v62, %v209_v35  ;;  %v228_v49 = vadd.s32 1, %v3192_v34  ;;  %vm227_vm15 = vc.u32 %v3199_v37, %v3191_v32 }
  0xfd   :  { %v337_v5 = vshll.u32 %v3205_v41, 30  ;;  %v497_v53 = vsub.s32 32, %v496_v42  ;;  %v495_v50 = vshrl.u32 %v494_v39, 5  ;;  %v499_v51 = vshll.u32 %v2962_v1, %v496_v42 }
  0xfe   :  { %v502_v52 = vshll.u32 %v2963_v3, %v496_v42  ;;  %v229_v54 = vsel %vm227_vm15, %v228_v49, %v3192_v34  ;;  %v505_v62 = vshll.u32 %v2964_v6, %v496_v42  ;;  %v508_v56 = vshll.u32 %v2965_v8, %v496_v42 }
  0xff   :  { %v3226_v63 = vsub.s32 %v334_v20, %v337_v5  ;;  %v500_v57 = vshrl.u32 %v2963_v3, %v497_v53  ;;  %v230_v59 = vadd.s32 %v229_v54, %v225_v48  ;;  %v503_v0 = vshrl.u32 %v2964_v6, %v497_v53 }
 0x100   :  { %v506_v2 = vshrl.u32 %v2965_v8, %v497_v53  ;;  %v509_v9 = vshrl.u32 %v2966_v10, %v497_v53  ;;  %v511_v11 = vshll.u32 %v2966_v10, %v496_v42  ;;  %v512_v14 = vshrl.u32 %v2967_v17, %v497_v53 }
 0x101   :  { %v340_v4 = vsub.s32 0, %v3226_v63  ;;  %v501_v7 = vor.u32 %v500_v57, %v499_v51  ;;  %v231_v12 = vadd.s32 536870912, %v230_v59  ;;  %v504_v13 = vor.u32 %v503_v0, %v502_v52 }
 0x102   :  { %v507_v58 = vor.u32 %v506_v2, %v505_v62  ;;  %v498_v16 = vshrl.u32 %v2962_v1, %v497_v53  ;;  %v510_v18 = vor.u32 %v509_v9, %v508_v56  ;;  %v2569_v61 = vadd.s32 4294967169, %v382_v47 }
 0x103   :  { %v2566_v15 = vmin.u32 %v340_v4, %v3226_v63  ;;  %v3240_v19 = vshrl.u32 %v231_v12, 30  ;;  %v513_v20 = vor.u32 %v512_v14, %v511_v11  ;;  %vm514_vm2 = vcmp.lt.s32.totalorder %v495_v50, 1 }
 0x104   :  { %vm517_vm3 = vcmp.lt.s32.totalorder %v495_v50, 4  ;;  %vm515_vm4 = vcmp.lt.s32.totalorder %v495_v50, 2  ;;  %v522_v23 = vsel %vm514_vm2, %v501_v7, %v504_v13  ;;  %vm516_vm5 = vcmp.lt.s32.totalorder %v495_v50, 3 }
 0x105   :  { %v342_v21 = vclz %v2566_v15  ;;  %v519_v22 = vsel %vm517_vm3, %v507_v58, 2102212464  ;;  %v233_v24 = vshll.u32 %v3240_v19, 30  ;;  %v523_v25 = vsel %vm517_vm3, %v510_v18, 920167782 }
 0x106   :  { %v526_v26 = vsel %vm514_vm2, %v504_v13, %v507_v58  ;;  %v518_v31 = vsel %vm514_vm2, %v498_v16, %v501_v7  ;;  %v524_v34 = vsel %vm516_vm5, %v507_v58, %v523_v25  ;;  %v527_v35 = vsel %vm517_vm3, %v513_v20, 1326507024 }
 0x107   :  { %v2567_v28 = vadd.s32 4294967294, %v342_v21  ;;  %v3243_v36 = vsub.s32 %v230_v59, %v233_v24  ;;  %v520_v39 = vsel %vm516_vm5, %v504_v13, %v519_v22  ;;  %v525_v40 = vsel %vm515_vm4, %v522_v23, %v524_v34 }
 0x108   :  { %v528_v42 = vsel %vm516_vm5, %v510_v18, %v527_v35  ;;  %v3248_v5 = vmul.u32.u64.low %v3216_v45, %v525_v40  ;;  %v3249_v48 = vmul.u32.u64.high %v3216_v45, %v525_v40, %v3248_v5  ;;  %v521_v62 = vsel %vm515_vm4, %v518_v31, %v520_v39 }
 0x109   :  { %vm2568_vm6 = vcmp.lt.s32.totalorder %v2567_v28, 0  ;;  %v529_v47 = vsel %vm515_vm4, %v526_v26, %v528_v42  ;;  %v236_v53 = vsub.s32 0, %v3243_v36  ;;  %v388_v59 = vadd.s32 1, %v2569_v61 }
 0x10a   :  { %v345_v49 = vsel %vm2568_vm6, 0, %v2567_v28  ;;  %v3254_v51 = vmul.u32.u64.low %v3216_v45, %v529_v47  ;;  %v3255_v52 = vmul.u32.u64.high %v3216_v45, %v529_v47, %v3254_v51  ;;  %v386_v56 = vor.u32 8388608, %v3209_v44 }
 0x10b   :  { %v346_v54 = vsub.s32 32, %v345_v49  ;;  %v350_v57 = vsub.s32 4294967266, %v345_v49  ;;  %v347_v0 = vshll.u32 %v3226_v63, %v345_v49  ;;  %v2562_v2 = vmin.u32 %v236_v53, %v3243_v36 }
 0x10c   :  { %v540_v9 = vadd.s32 1, %v3249_v48  ;;  %vm389_vm7 = vcmp.gt.s32.totalorder %v388_v59, 0  ;;  %v537_v12 = vmul.u32 %v3216_v45, %v521_v62  ;;  %vm539_vm8 = vc.u32 %v3255_v52, %v3248_v5 }
 0x10d   :  { %v348_v4 = vshrl.u32 %v3212_v60, %v346_v54  ;;  %v351_v7 = vadd.s32 127, %v350_v57  ;;  %v238_v11 = vclz %v2562_v2  ;;  %v390_v50 = vsel %vm389_vm7, %v388_v59, 0 }
 0x10e   :  { %v226_v63 = vadd.s32 %v3191_v32, %v3199_v37  ;;  %v541_v44 = vsel %vm539_vm8, %v540_v9, %v3249_v48  ;;  %vm276_vm9 = vcmp.lt.s32.totalorder %v3105_v27, 0  ;;  %v3270_v15 = vshrl.u32 %v390_v50, 5 }
 0x10f   :  { %v349_v13 = vor.u32 %v348_v4, %v347_v0  ;;  %v352_v58 = vshll.u32 %v351_v7, 23  ;;  %v2563_v60 = vadd.s32 4294967294, %v238_v11  ;;  %v542_v14 = vadd.s32 %v541_v44, %v537_v12 }
 0x110   :  { %v392_v16 = vand.u32 31, %v390_v50  ;;  %vm3274_vm10 = vcmp.le.f32.partialorder %v274_v30, 0.7853982  ;;  %v3278_v61 = vshll.u32 %v386_v56, 8  ;;  %v256_v32 = vsub.s32 4, %v3240_v19 }
 0x111   :  { %v353_v18 = vor.u32 4788187, %v352_v58  ;;  %v360_v37 = vsub.s32 4, %v3205_v41  ;;  %v356_v20 = vcvt.s32.f32 %v349_v13  ;;  %vm2564_vm11 = vcmp.lt.s32.totalorder %v2563_v60, 0 }
 0x112   :  { %v543_v21 = vadd.s32 536870912, %v542_v14  ;;  %v393_v22 = vsub.s32 32, %v392_v16  ;;  %v241_v24 = vsel %vm2564_vm11, 0, %v2563_v60  ;;  %v395_v25 = vshll.u32 %v2962_v1, %v392_v16 }
 0x113   :  { %v354_v23 = vand.u32 2147483647, %v353_v18  ;;  %v398_v30 = vshll.u32 %v2963_v3, %v392_v16  ;;  %v242_v26 = vsub.s32 32, %v241_v24  ;;  %v246_v28 = vsub.s32 4294967266, %v241_v24 }
 0x114   :  { %v3284_v31 = vshrl.u32 %v543_v21, 30  ;;  %v401_v34 = vshll.u32 %v2964_v6, %v392_v16  ;;  %vm410_vm12 = vcmp.lt.s32.totalorder %v3270_v15, 1  ;;  %v243_v39 = vshll.u32 %v3243_v36, %v241_v24 }
 0x115   :  { %v357_v35 = vmul.f32 %v356_v20, %v354_v23  ;;  %v396_v40 = vshrl.u32 %v2963_v3, %v393_v22  ;;  %v399_v42 = vshrl.u32 %v2964_v6, %v393_v22  ;;  %v244_v47 = vshrl.u32 %v226_v63, %v242_v26 }
 0x116   :  { %v247_v48 = vadd.s32 127, %v246_v28  ;;  %v545_v49 = vshll.u32 %v3284_v31, 30  ;;  %v402_v53 = vshrl.u32 %v2965_v8, %v393_v22  ;;  %v404_v62 = vshll.u32 %v2965_v8, %v392_v16 }
 0x117   :  { %v358_v51 = vxor.u32 2147483648, %v357_v35  ;;  %v397_v54 = vor.u32 %v396_v40, %v395_v25  ;;  %v400_v57 = vor.u32 %v399_v42, %v398_v30  ;;  %vm172_vm13 = vcmp.lt.s32.totalorder %v3107_v29, 0 }
 0x118   :  { %v245_v59 = vor.u32 %v244_v47, %v243_v39  ;;  %v248_v0 = vshll.u32 %v247_v48, 23  ;;  %v3295_v36 = vsub.s32 %v542_v14, %v545_v49  ;;  %v403_v2 = vor.u32 %v402_v53, %v401_v34 }
 0x119   :  { %v359_v56 = vsel %vm276_vm9, %v358_v51, %v357_v35  ;;  %v405_v4 = vshrl.u32 %v2966_v10, %v393_v22  ;;  %v407_v7 = vshll.u32 %v2966_v10, %v392_v16  ;;  %v408_v9 = vshrl.u32 %v2967_v17, %v393_v22 }
 0x11a   :  { %v362_v11 = vsel %vm3274_vm10, %v3105_v27, %v359_v56  ;;  %vm3307_vm15 = vcmp.le.f32.partialorder %v170_v33, 0.7853982  ;;  %v249_v50 = vor.u32 4788187, %v248_v0  ;;  %v548_v13 = vsub.s32 0, %v3295_v36 }
 0x11b   :  { %v394_v58 = vshrl.u32 %v2962_v1, %v393_v22  ;;  %2868 = vcosq.f32 %v362_v11  ;;  %v252_v63 = vcvt.s32.f32 %v245_v59  ;;  %v406_v44 = vor.u32 %v405_v4, %v404_v62 }
 0x11c   :  { %v409_v60 = vor.u32 %v408_v9, %v407_v7  ;;  %2870 = vsinq.f32 %v362_v11  ;;  %v250_v14 = vand.u32 2147483647, %v249_v50  ;;  %v2574_v16 = vmin.u32 %v548_v13, %v3295_v36 }
 0x11d   :  { %vm413_vm2 = vcmp.lt.s32.totalorder %v3270_v15, 4  ;;  %vm412_vm3 = vcmp.lt.s32.totalorder %v3270_v15, 3  ;;  %v418_v18 = vsel %vm410_vm12, %v397_v54, %v400_v57  ;;  %vm411_vm4 = vcmp.lt.s32.totalorder %v3270_v15, 2 }
 0x11e   :  { %v415_v33 = vsel %vm413_vm2, %v403_v2, 2102212464  ;;  %v419_v20 = vsel %vm413_vm2, %v406_v44, 920167782  ;;  %v253_v21 = vmul.f32 %v252_v63, %v250_v14  ;;  %v550_v23 = vclz %v2574_v16 }
 0x11f   :  { %v420_v22 = vsel %vm412_vm3, %v403_v2, %v419_v20  ;;  %v414_v24 = vsel %vm410_vm12, %v394_v58, %v397_v54  ;;  %v422_v30 = vsel %vm410_vm12, %v400_v57, %v403_v2  ;;  %v423_v26 = vsel %vm413_vm2, %v409_v60, 1326507024 }
 0x120   :  { %v421_v25 = vsel %vm411_vm4, %v418_v18, %v420_v22  ;;  %v254_v28 = vxor.u32 2147483648, %v253_v21  ;;  %v2575_v34 = vadd.s32 4294967294, %v550_v23  ;;  %v416_v35 = vsel %vm412_vm3, %v400_v57, %v415_v33 }
 0x121   :  { %v424_v39 = vsel %vm412_vm3, %v406_v44, %v423_v26  ;;  %v3328_v42 = vmul.u32.u64.low %v3278_v61, %v421_v25  ;;  %v3329_v47 = vmul.u32.u64.high %v3278_v61, %v421_v25, %v3328_v42  ;;  %v257_v48 = vsel %vm172_vm13, %v256_v32, %v3240_v19 }
 0x122   :  { %v425_v40 = vsel %vm411_vm4, %v422_v30, %v424_v39  ;;  %v255_v49 = vsel %vm172_vm13, %v254_v28, %v253_v21  ;;  %vm2576_vm5 = vcmp.lt.s32.totalorder %v2575_v34, 0  ;;  %v417_v62 = vsel %vm411_vm4, %v414_v24, %v416_v35 }
 0x123   :  { %v3340_v53 = vmul.u32.u64.low %v3278_v61, %v425_v40  ;;  %v3341_v51 = vmul.u32.u64.high %v3278_v61, %v425_v40, %v3340_v53  ;;  %v258_v54 = vsel %vm3307_vm15, %v3107_v29, %v255_v49  ;;  %v553_v57 = vsel %vm2576_vm5, 0, %v2575_v34 }
 0x124   :  { %v361_v19 = vsel %vm276_vm9, %v360_v37, %v3205_v41  ;;  %2872 = vcosq.f32 %v258_v54  ;;  %v558_v32 = vsub.s32 4294967266, %v553_v57  ;;  %v259_v59 = vsel %vm3307_vm15, 0, %v257_v48 }
 0x125   :  { %v2869_v0 = vpop.eup %2868  ;;  %2874 = vsinq.f32 %v258_v54  ;;  %v436_v2 = vadd.s32 1, %v3329_v47  ;;  %v363_v56 = vsel %vm3274_vm10, 0, %v361_v19  ;;  %v554_v4 = vsub.s32 32, %v553_v57 }
 0x126   :  { %v2871_v15 = vpop.eup %2870  ;;  %v559_v7 = vadd.s32 127, %v558_v32  ;;  %v433_v9 = vmul.u32 %v3278_v61, %v417_v62  ;;  %vm435_vm6 = vc.u32 %v3341_v51, %v3328_v42  ;;  %v263_v37 = vadd.s32 3, %v259_v59 }
 0x127   :  { %v437_v41 = vsel %vm435_vm6, %v436_v2, %v3329_v47  ;;  %v538_v11 = vadd.s32 %v3248_v5, %v3255_v52  ;;  %v367_v13 = vadd.s32 3, %v363_v56  ;;  %v371_v58 = vxor.u32 2147483648, %v2871_v15 }
 0x128   :  { %v560_v12 = vshll.u32 %v559_v7, 23  ;;  %v438_v50 = vadd.s32 %v437_v41, %v433_v9  ;;  %v374_v60 = vxor.u32 2147483648, %v2869_v0  ;;  %v264_v14 = vand.u32 3, %v263_v37 }
 0x129   :  { %v556_v45 = vshrl.u32 %v538_v11, %v554_v4  ;;  %v368_v44 = vand.u32 3, %v367_v13  ;;  %v555_v61 = vshll.u32 %v3295_v36, %v553_v57  ;;  %vm366_vm11 = vweird.f32 %v3105_v27 }
 0x12a   :  { %v439_v63 = vadd.s32 536870912, %v438_v50  ;;  %v561_v16 = vor.u32 4788187, %v560_v12  ;;  %vm269_vm10 = vcmp.eq.s32.totalorder %v264_v14, 2  ;;  %vm266_vm12 = vcmp.eq.s32.totalorder %v264_v14, 0 }
 0x12b   :  { %vm370_vm7 = vcmp.eq.s32.totalorder %v368_v44, 0  ;;  %vm373_vm8 = vcmp.eq.s32.totalorder %v368_v44, 2  ;;  %v557_v21 = vor.u32 %v556_v45, %v555_v61  ;;  %vm369_vm9 = vcmp.lt.s32.totalorder %v368_v44, 2 }
 0x12c   :  { %v3365_v33 = vshrl.u32 %v439_v63, 30  ;;  %v372_v18 = vsel %vm370_vm7, %v2869_v0, %v371_v58  ;;  %v375_v52 = vsel %vm373_vm8, %v374_v60, %v2871_v15  ;;  %v562_v25 = vand.u32 2147483647, %v561_v16 }
 0x12d   :  { %v376_v24 = vsel %vm369_vm9, %v372_v18, %v375_v52  ;;  %v564_v34 = vcvt.s32.f32 %v557_v21  ;;  %vm265_vm13 = vcmp.lt.s32.totalorder %v264_v14, 2  ;;  %vm262_vm15 = vweird.f32 %v3107_v29 }
 0x12e   :  { %v2873_v20 = vpop.eup %2872  ;;  %v441_v5 = vshll.u32 %v3365_v33, 30  ;;  %v377_v26 = vsel %vm366_vm11, nan, %v376_v24  ;;  %vm484_vm3 = vcmp.lt.s32.totalorder %v3115_v38, 0  ;;  %v434_v29 = vadd.s32 %v3328_v42, %v3341_v51 }
 0x12f   :  { %v2875_v23 = vpop.eup %2874  ;;  %v270_v22 = vxor.u32 2147483648, %v2873_v20  ;;  %v565_v47 = vmul.f32 %v564_v34, %v562_v25  ;;  %vm3377_vm4 = vcmp.le.f32.partialorder %v482_v43, 0.7853982  ;;  %v568_v41 = vsub.s32 4, %v3284_v31 }
 0x130   :  { %v442_v36 = vsub.s32 %v438_v50, %v441_v5  ;;  %v267_v30 = vxor.u32 2147483648, %v2875_v23  ;;  %v464_v12 = vsub.s32 4, %v3365_v33  ;;  %vm380_vm5 = vcmp.lt.s32.totalorder %v3121_v46, 0 }
 0x131   :  { %v271_v28 = vsel %vm269_vm10, %v270_v22, %v2875_v23  ;;  %v566_v27 = vxor.u32 2147483648, %v565_v47  ;;  %v569_v43 = vsel %vm484_vm3, %v568_v41, %v3284_v31  ;;  %vm379_vm6 = vcmp.le.f32.partialorder %v378_v55, 0.7853982 }
 0x132   :  { %v444_v35 = vsub.s32 0, %v442_v36  ;;  %v268_v39 = vsel %vm266_vm12, %v2873_v20, %v267_v30  ;;  %v571_v13 = vsel %vm3377_vm4, 0, %v569_v43  ;;  %v465_v45 = vsel %vm380_vm5, %v464_v12, %v3365_v33 }
 0x133   :  { %v272_v40 = vsel %vm265_vm13, %v268_v39, %v271_v28  ;;  %v567_v19 = vsel %vm484_vm3, %v566_v27, %v565_v47  ;;  %v575_v44 = vadd.s32 3, %v571_v13  ;;  %v467_v14 = vsel %vm379_vm6, 0, %v465_v45  ;;  %v588_v39 = vld [vmem:[%s4370_s2 + $0x10] sm:$0xff] }
 0x134   :  { %v2570_v48 = vmin.u32 %v444_v35, %v442_v36  ;;  %v273_v49 = vsel %vm262_vm15, nan, %v272_v40  ;;  %v570_v4 = vsel %vm3377_vm4, %v3115_v38, %v567_v19  ;;  %v471_v16 = vadd.s32 3, %v467_v14  ;;  %v587_v35 = vld [vmem:[%s4370_s2 + $0x8] sm:$0xff]  ;;  %v597_v40 = vpop.permute.xlu0 %596 }
 0x135   :  { %v2754_v53 = vpack.c.bf16 %v377_v26, %v273_v49  ;;  %2876 = vcosq.f32 %v570_v4  ;;  %v576_v61 = vand.u32 3, %v575_v44  ;;  %vm574_vm12 = vweird.f32 %v3115_v38  ;;  %v589_v38 = vld [vmem:[%s4370_s2 + $0x18] sm:$0xff] }
 0x136   :  { %v446_v54 = vclz %v2570_v48  ;;  %2878 = vsinq.f32 %v570_v4  ;;  %v472_v21 = vand.u32 3, %v471_v16  ;;  %vm470_vm15 = vweird.f32 %v3121_v46 }
 0x137   :  { %2755 = vmatprep.subr.bf16.mxu1 %v2754_v53  ;;  %vm578_vm7 = vcmp.eq.s32.totalorder %v576_v61, 0  ;;  %vm581_vm8 = vcmp.eq.s32.totalorder %v576_v61, 2  ;;  %vm577_vm9 = vcmp.lt.s32.totalorder %v576_v61, 2 }
 0x138   :  { %v2571_v57 = vadd.s32 4294967294, %v446_v54  ;;  %2757 = vmatpush3.bf16.msra.mxu1 %v2754_v53  ;;  %vm477_vm10 = vcmp.eq.s32.totalorder %v472_v21, 2  ;;  %vm474_vm11 = vcmp.eq.s32.totalorder %v472_v21, 0  ;;  %vm473_vm13 = vcmp.lt.s32.totalorder %v472_v21, 2 }
 0x13a   :  { %vm2572_vm2 = vcmp.lt.s32.totalorder %v2571_v57, 0 }
 0x13b   :  { %v449_v62 = vsel %vm2572_vm2, 0, %v2571_v57 }
 0x13c   :  { %v450_v32 = vsub.s32 32, %v449_v62  ;;  %v454_v59 = vsub.s32 4294967266, %v449_v62  ;;  %v451_v2 = vshll.u32 %v442_v36, %v449_v62 }
 0x13e   :  { %v452_v56 = vshrl.u32 %v434_v29, %v450_v32  ;;  %v455_v15 = vadd.s32 127, %v454_v59 }
 0x13f   :  { %v2877_v60 = vpop.eup %2876 }
 0x140   :  { %v453_v7 = vor.u32 %v452_v56, %v451_v2  ;;  %v456_v9 = vshll.u32 %v455_v15, 23  ;;  %v2879_v31 = vpop.eup %2878  ;;  %v582_v20 = vxor.u32 2147483648, %v2877_v60  ;;  %v607_v56 = vpop.permute.xlu0 %606 }
 0x141   :  { %v579_v18 = vxor.u32 2147483648, %v2879_v31 }
 0x142   :  { %v457_v42 = vor.u32 4788187, %v456_v9  ;;  %v460_v37 = vcvt.s32.f32 %v453_v7  ;;  %v583_v55 = vsel %vm581_vm8, %v582_v20, %v2879_v31 }
 0x143   :  { %v580_v5 = vsel %vm578_vm7, %v2877_v60, %v579_v18 }
 0x144   :  { %v458_v51 = vand.u32 2147483647, %v457_v42  ;;  %v584_v22 = vsel %vm577_vm9, %v580_v5, %v583_v55 }
 0x145   :  { %v585_v30 = vsel %vm574_vm12, nan, %v584_v22 }
 0x146   :  { %v461_v11 = vmul.f32 %v460_v37, %v458_v51 }
 0x148   :  { %v462_v50 = vxor.u32 2147483648, %v461_v11 }
 0x14a   :  { %v463_v58 = vsel %vm380_vm5, %v462_v50, %v461_v11 }
 0x14b   :  { %v466_v63 = vsel %vm379_vm6, %v3121_v46, %v463_v58  ;;  %v602_v46 = vpop.permute.xlu1 %601  ;;  %v1128_v58 = vld [vmem:[%s4371_s3] sm:$0xff] }
 0x14c   :  { %2880 = vcosq.f32 %v466_v63  ;;  %2713 = vmatprep.mubr.msk.f32.mxu0 %vm614_vm14, %v1128_v58 }
 0x14d   :  { %2882 = vsinq.f32 %v466_v63 }
 0x14f   :  { %v612_v57 = vpop.permute.xlu1 %611 }
 0x156   :  { %v2881_v52 = vpop.eup %2880 }
 0x157   :  { %v2883_v33 = vpop.eup %2882  ;;  %v478_v23 = vxor.u32 2147483648, %v2881_v52 }
 0x158   :  { %v475_v24 = vxor.u32 2147483648, %v2883_v33 }
 0x159   :  { %v479_v25 = vsel %vm477_vm10, %v478_v23, %v2883_v33 }
 0x15a   :  { %v476_v36 = vsel %vm474_vm11, %v2881_v52, %v475_v24 }
 0x15b   :  { %v480_v26 = vsel %vm473_vm13, %v476_v36, %v479_v25 }
 0x15c   :  { %v481_v28 = vsel %vm470_vm15, nan, %v480_v26 }
 0x15d   :  { %v2758_v34 = vpack.c.bf16 %v585_v30, %v481_v28 }
 0x15f   :  { %2759 = vmatprep.subr.bf16.mxu1 %v2758_v34 }
 0x160   :  { %2761 = vmatpush3.bf16.msra.mxu1 %v2758_v34 }
 0x163   :  { %2700 = vmatmul.mubr.msk.f32.vlgmr.msra.gmra.mrb[4].mxu1 %vm614_vm14, %v587_v35 }
 0x164   :  { %2702 = vmatprep.mubr.msk.f32.mxu1 %vm614_vm14, %v588_v39 }
 0x167   :  { %2703 = vmatmul.mubr.msk.f32.gmra.mrb[6].mxu1 %vm614_vm14, %v589_v38 }
 0x236   :  { %v2701_v47 = vpop.f32.mrb[4].mxu1 }
 0x237   :  { %v3410_v48 = vadd.f32 %v2701_v47, %v602_v46  ;;  %v693_v49 = vpop.f32.mrb[5].mxu1 }
 0x238   :  { %v3412_v53 = vadd.f32 %v693_v49, %v597_v40 }
 0x239   :  { %v816_v54 = vand.u32 2147483647, %v3410_v48  ;;  %v819_v27 = vand.u32 2139095040, %v3410_v48 }
 0x23a   :  { %v712_v62 = vand.u32 2147483647, %v3412_v53  ;;  %v715_v19 = vand.u32 2139095040, %v3412_v53  ;;  %v2704_v29 = vpop.f32.mrb[6].mxu1 }
 0x23b   :  { %v820_v32 = vshrl.u32 %v819_v27, 23  ;;  %v823_v59 = vand.u32 8388607, %v816_v54  ;;  %v3420_v0 = vadd.f32 %v2704_v29, %v612_v57  ;;  %v703_v2 = vpop.f32.mrb[7].mxu1 }
 0x23c   :  { %v716_v15 = vshrl.u32 %v715_v19, 23  ;;  %v719_v4 = vand.u32 8388607, %v712_v62  ;;  %v3425_v41 = vadd.f32 %v703_v2, %v607_v56 }
 0x23d   :  { %v2585_v7 = vadd.s32 4294967169, %v820_v32  ;;  %v1024_v9 = vand.u32 2147483647, %v3420_v0  ;;  %v824_v42 = vor.u32 8388608, %v823_v59  ;;  %v1027_v37 = vand.u32 2139095040, %v3420_v0 }
 0x23e   :  { %v2581_v51 = vadd.s32 4294967169, %v716_v15  ;;  %v720_v11 = vor.u32 8388608, %v719_v4  ;;  %v920_v45 = vand.u32 2147483647, %v3425_v41  ;;  %v923_v5 = vand.u32 2139095040, %v3425_v41 }
 0x23f   :  { %v826_v43 = vadd.s32 1, %v2585_v7  ;;  %v1028_v50 = vshrl.u32 %v1027_v37, 23  ;;  %v3430_v13 = vand.u32 8388607, %v1024_v9  ;;  %v3437_v44 = vshll.u32 %v824_v42, 8 }
 0x240   :  { %v722_v12 = vadd.s32 1, %v2581_v51  ;;  %v3439_v16 = vshll.u32 %v720_v11, 8 }
 0x241   :  { %vm827_vm2 = vcmp.gt.s32.totalorder %v826_v43, 0  ;;  %v2593_v60 = vadd.s32 4294967169, %v1028_v50  ;;  %v1032_v21 = vor.u32 8388608, %v3430_v13 }
 0x242   :  { %v828_v63 = vsel %vm827_vm2, %v826_v43, 0  ;;  %vm723_vm3 = vcmp.gt.s32.totalorder %v722_v12, 0 }
 0x243   :  { %v829_v31 = vshrl.u32 %v828_v63, 5  ;;  %v830_v14 = vand.u32 31, %v828_v63  ;;  %v724_v61 = vsel %vm723_vm3, %v722_v12, 0  ;;  %v3447_v23 = vadd.s32 1, %v2593_v60 }
 0x244   :  { %v3441_v18 = vshrl.u32 %v724_v61, 5  ;;  %v726_v20 = vand.u32 31, %v724_v61 }
 0x245   :  { %v831_v55 = vsub.s32 32, %v830_v14  ;;  %v833_v52 = vshll.u32 %v2962_v1, %v830_v14  ;;  %v836_v33 = vshll.u32 %v2963_v3, %v830_v14  ;;  %v839_v22 = vshll.u32 %v2964_v6, %v830_v14 }
 0x246   :  { %v842_v24 = vshll.u32 %v2965_v8, %v830_v14  ;;  %v845_v25 = vshll.u32 %v2966_v10, %v830_v14  ;;  %vm848_vm4 = vcmp.lt.s32.totalorder %v829_v31, 1  ;;  %vm849_vm5 = vcmp.lt.s32.totalorder %v829_v31, 2 }
 0x247   :  { %v834_v36 = vshrl.u32 %v2963_v3, %v831_v55  ;;  %v837_v30 = vshrl.u32 %v2964_v6, %v831_v55  ;;  %v840_v26 = vshrl.u32 %v2965_v8, %v831_v55  ;;  %v832_v28 = vshrl.u32 %v2962_v1, %v831_v55 }
 0x248   :  { %v843_v34 = vshrl.u32 %v2966_v10, %v831_v55  ;;  %v846_v35 = vshrl.u32 %v2967_v17, %v831_v55  ;;  %vm850_vm6 = vcmp.lt.s32.totalorder %v829_v31, 3  ;;  %v727_v40 = vsub.s32 32, %v726_v20 }
 0x249   :  { %v835_v39 = vor.u32 %v834_v36, %v833_v52  ;;  %v838_v38 = vor.u32 %v837_v30, %v836_v33  ;;  %v841_v46 = vor.u32 %v840_v26, %v839_v22  ;;  %vm851_vm7 = vcmp.lt.s32.totalorder %v829_v31, 4 }
 0x24a   :  { %v844_v47 = vor.u32 %v843_v34, %v842_v24  ;;  %v847_v49 = vor.u32 %v846_v35, %v845_v25  ;;  %v729_v27 = vshll.u32 %v2962_v1, %v726_v20  ;;  %v732_v15 = vshll.u32 %v2963_v3, %v726_v20 }
 0x24b   :  { %v852_v57 = vsel %vm848_vm4, %v832_v28, %v835_v39  ;;  %v853_v19 = vsel %vm851_vm7, %v841_v46, 2102212464  ;;  %v856_v29 = vsel %vm848_vm4, %v835_v39, %v838_v38  ;;  %v860_v32 = vsel %vm848_vm4, %v838_v38, %v841_v46 }
 0x24c   :  { %v854_v59 = vsel %vm850_vm6, %v838_v38, %v853_v19  ;;  %v857_v2 = vsel %vm851_vm7, %v844_v47, 920167782  ;;  %v861_v56 = vsel %vm851_vm7, %v847_v49, 1326507024  ;;  %v728_v42 = vshrl.u32 %v2962_v1, %v727_v40 }
 0x24d   :  { %v858_v4 = vsel %vm850_vm6, %v841_v46, %v857_v2  ;;  %v862_v7 = vsel %vm850_vm6, %v844_v47, %v861_v56  ;;  %v730_v51 = vshrl.u32 %v2963_v3, %v727_v40  ;;  %v855_v37 = vsel %vm849_vm5, %v852_v57, %v854_v59 }
 0x24e   :  { %v859_v43 = vsel %vm849_vm5, %v856_v29, %v858_v4  ;;  %v863_v11 = vsel %vm849_vm5, %v860_v32, %v862_v7  ;;  %v733_v12 = vshrl.u32 %v2964_v6, %v727_v40  ;;  %v735_v55 = vshll.u32 %v2964_v6, %v726_v20 }
 0x24f   :  { %v3473_v50 = vmul.u32.u64.low %v3437_v44, %v863_v11  ;;  %v3474_v58 = vmul.u32.u64.high %v3437_v44, %v863_v11, %v3473_v50  ;;  %v3477_v63 = vmul.u32.u64.low %v3437_v44, %v859_v43  ;;  %v3478_v60 = vmul.u32.u64.high %v3437_v44, %v859_v43, %v3477_v63 }
 0x250   :  { %v731_v14 = vor.u32 %v730_v51, %v729_v27  ;;  %v734_v61 = vor.u32 %v733_v12, %v732_v15  ;;  %v736_v52 = vshrl.u32 %v2965_v8, %v727_v40  ;;  %v871_v31 = vmul.u32 %v3437_v44, %v855_v37 }
 0x251   :  { %v738_v33 = vshll.u32 %v2965_v8, %v726_v20  ;;  %v739_v22 = vshrl.u32 %v2966_v10, %v727_v40  ;;  %v742_v24 = vshrl.u32 %v2967_v17, %v727_v40  ;;  %v741_v36 = vshll.u32 %v2966_v10, %v726_v20 }
 0x252   :  { %v737_v25 = vor.u32 %v736_v52, %v735_v55  ;;  %vm744_vm8 = vcmp.lt.s32.totalorder %v3441_v18, 1  ;;  %vm745_vm9 = vcmp.lt.s32.totalorder %v3441_v18, 2  ;;  %vm873_vm10 = vc.u32 %v3474_v58, %v3477_v63 }
 0x253   :  { %v874_v30 = vadd.s32 1, %v3478_v60  ;;  %v740_v26 = vor.u32 %v739_v22, %v738_v33  ;;  %vm746_vm11 = vcmp.lt.s32.totalorder %v3441_v18, 3  ;;  %v743_v44 = vor.u32 %v742_v24, %v741_v36 }
 0x254   :  { %vm747_vm12 = vcmp.lt.s32.totalorder %v3441_v18, 4  ;;  %v748_v28 = vsel %vm744_vm8, %v728_v42, %v731_v14  ;;  %v752_v34 = vsel %vm744_vm8, %v731_v14, %v734_v61  ;;  %v756_v38 = vsel %vm744_vm8, %v734_v61, %v737_v25 }
 0x255   :  { %v875_v35 = vsel %vm873_vm10, %v874_v30, %v3478_v60  ;;  %v749_v20 = vsel %vm747_vm12, %v737_v25, 2102212464  ;;  %v753_v39 = vsel %vm747_vm12, %v740_v26, 920167782  ;;  %v757_v49 = vsel %vm747_vm12, %v743_v44, 1326507024 }
 0x256   :  { %v876_v46 = vadd.s32 %v875_v35, %v871_v31  ;;  %v750_v40 = vsel %vm746_vm11, %v734_v61, %v749_v20  ;;  %v754_v47 = vsel %vm746_vm11, %v737_v25, %v753_v39  ;;  %v758_v19 = vsel %vm746_vm11, %v740_v26, %v757_v49 }
 0x257   :  { %v751_v27 = vsel %vm745_vm9, %v748_v28, %v750_v40  ;;  %v755_v57 = vsel %vm745_vm9, %v752_v34, %v754_v47  ;;  %vm1035_vm13 = vcmp.gt.s32.totalorder %v3447_v23, 0  ;;  %v759_v32 = vsel %vm745_vm9, %v756_v38, %v758_v19 }
 0x258   :  { %v877_v29 = vadd.s32 536870912, %v876_v46  ;;  %v3504_v59 = vmul.u32.u64.low %v3439_v16, %v755_v57  ;;  %v3505_v2 = vmul.u32.u64.high %v3439_v16, %v755_v57, %v3504_v59  ;;  %v1036_v4 = vsel %vm1035_vm13, %v3447_v23, 0 }
 0x259   :  { %v3509_v56 = vmul.u32.u64.low %v3439_v16, %v759_v32  ;;  %v3510_v15 = vmul.u32.u64.high %v3439_v16, %v759_v32, %v3509_v56  ;;  %v924_v7 = vshrl.u32 %v923_v5, 23  ;;  %v1038_v51 = vand.u32 31, %v1036_v4 }
 0x25a   :  { %v3515_v42 = vshrl.u32 %v877_v29, 30  ;;  %v767_v18 = vmul.u32 %v3439_v16, %v751_v27  ;;  %v3520_v37 = vshll.u32 %v1032_v21, 8  ;;  %v3524_v43 = vand.u32 8388607, %v920_v45 }
 0x25b   :  { %v770_v23 = vadd.s32 1, %v3505_v2  ;;  %v1037_v12 = vshrl.u32 %v1036_v4, 5  ;;  %v1039_v50 = vsub.s32 32, %v1038_v51  ;;  %vm769_vm15 = vc.u32 %v3510_v15, %v3504_v59 }
 0x25c   :  { %v879_v11 = vshll.u32 %v3515_v42, 30  ;;  %v1041_v5 = vshll.u32 %v2962_v1, %v1038_v51  ;;  %v1044_v16 = vshll.u32 %v2963_v3, %v1038_v51  ;;  %v2589_v13 = vadd.s32 4294967169, %v924_v7 }
 0x25d   :  { %v771_v60 = vsel %vm769_vm15, %v770_v23, %v3505_v2  ;;  %v1042_v14 = vshrl.u32 %v2963_v3, %v1039_v50  ;;  %v1047_v61 = vshll.u32 %v2964_v6, %v1038_v51  ;;  %v1045_v52 = vshrl.u32 %v2964_v6, %v1039_v50 }
 0x25e   :  { %v3532_v21 = vsub.s32 %v876_v46, %v879_v11  ;;  %v772_v55 = vadd.s32 %v771_v60, %v767_v18  ;;  %v1048_v31 = vshrl.u32 %v2965_v8, %v1039_v50  ;;  %v1050_v33 = vshll.u32 %v2965_v8, %v1038_v51 }
 0x25f   :  { %v1043_v24 = vor.u32 %v1042_v14, %v1041_v5  ;;  %v1051_v25 = vshrl.u32 %v2966_v10, %v1039_v50  ;;  %v1053_v36 = vshll.u32 %v2966_v10, %v1038_v51  ;;  %v1046_v26 = vor.u32 %v1045_v52, %v1044_v16 }
 0x260   :  { %v882_v22 = vsub.s32 0, %v3532_v21  ;;  %v773_v30 = vadd.s32 536870912, %v772_v55  ;;  %v1049_v44 = vor.u32 %v1048_v31, %v1047_v61  ;;  %v1054_v28 = vshrl.u32 %v2967_v17, %v1039_v50 }
 0x261   :  { %v1040_v35 = vshrl.u32 %v2962_v1, %v1039_v50  ;;  %v1052_v20 = vor.u32 %v1051_v25, %v1050_v33  ;;  %vm1056_vm2 = vcmp.lt.s32.totalorder %v1037_v12, 1  ;;  %vm1058_vm3 = vcmp.lt.s32.totalorder %v1037_v12, 3 }
 0x262   :  { %v2586_v34 = vmin.u32 %v882_v22, %v3532_v21  ;;  %v774_v39 = vshrl.u32 %v773_v30, 30  ;;  %v1055_v38 = vor.u32 %v1054_v28, %v1053_v36  ;;  %vm1059_vm4 = vcmp.lt.s32.totalorder %v1037_v12, 4 }
 0x263   :  { %v1060_v40 = vsel %vm1056_vm2, %v1040_v35, %v1043_v24  ;;  %v1061_v47 = vsel %vm1059_vm4, %v1049_v44, 2102212464  ;;  %v1064_v49 = vsel %vm1056_vm2, %v1043_v24, %v1046_v26  ;;  %v1065_v19 = vsel %vm1059_vm4, %v1052_v20, 920167782 }
 0x264   :  { %v884_v46 = vclz %v2586_v34  ;;  %v775_v27 = vshll.u32 %v774_v39, 30  ;;  %v1062_v57 = vsel %vm1058_vm3, %v1046_v26, %v1061_v47  ;;  %v1068_v29 = vsel %vm1056_vm2, %v1046_v26, %v1049_v44 }
 0x265   :  { %vm1057_vm5 = vcmp.lt.s32.totalorder %v1037_v12, 2  ;;  %v1066_v2 = vsel %vm1058_vm3, %v1049_v44, %v1065_v19  ;;  %v1069_v56 = vsel %vm1059_vm4, %v1055_v38, 1326507024  ;;  %v872_v61 = vadd.s32 %v3477_v63, %v3474_v58 }
 0x266   :  { %v2587_v32 = vadd.s32 4294967294, %v884_v46  ;;  %v3548_v4 = vsub.s32 %v772_v55, %v775_v27  ;;  %v1063_v7 = vsel %vm1057_vm5, %v1060_v40, %v1062_v57  ;;  %v1067_v51 = vsel %vm1057_vm5, %v1064_v49, %v1066_v2 }
 0x267   :  { %v1070_v18 = vsel %vm1058_vm3, %v1052_v20, %v1069_v56  ;;  %v3552_v23 = vmul.u32.u64.low %v3520_v37, %v1067_v51  ;;  %v3553_v50 = vmul.u32.u64.high %v3520_v37, %v1067_v51, %v3552_v23  ;;  %v930_v52 = vadd.s32 1, %v2589_v13 }
 0x268   :  { %vm2588_vm6 = vcmp.lt.s32.totalorder %v2587_v32, 0  ;;  %v1071_v11 = vsel %vm1057_vm5, %v1068_v29, %v1070_v18  ;;  %v778_v16 = vsub.s32 0, %v3548_v4  ;;  %v1079_v22 = vmul.u32 %v3520_v37, %v1063_v7 }
 0x269   :  { %v887_v5 = vsel %vm2588_vm6, 0, %v2587_v32  ;;  %v3558_v60 = vmul.u32.u64.low %v3520_v37, %v1071_v11  ;;  %v3559_v14 = vmul.u32.u64.high %v3520_v37, %v1071_v11, %v3558_v60  ;;  %v928_v24 = vor.u32 8388608, %v3524_v43 }
 0x26a   :  { %v888_v55 = vsub.s32 32, %v887_v5  ;;  %v892_v12 = vsub.s32 4294967266, %v887_v5  ;;  %v889_v31 = vshll.u32 %v3532_v21, %v887_v5  ;;  %v2582_v33 = vmin.u32 %v778_v16, %v3548_v4 }
 0x26b   :  { %v1082_v30 = vadd.s32 1, %v3553_v50  ;;  %vm931_vm7 = vcmp.gt.s32.totalorder %v930_v52, 0  ;;  %vm1081_vm8 = vc.u32 %v3559_v14, %v3552_v23  ;;  %v798_v63 = vsub.s32 4, %v774_v39 }
 0x26c   :  { %v890_v25 = vshrl.u32 %v872_v61, %v888_v55  ;;  %v893_v36 = vadd.s32 127, %v892_v12  ;;  %v780_v26 = vclz %v2582_v33  ;;  %v932_v58 = vsel %vm931_vm7, %v930_v52, 0 }
 0x26d   :  { %vm714_vm9 = vcmp.lt.s32.totalorder %v3412_v53, 0  ;;  %v1083_v21 = vsel %vm1081_vm8, %v1082_v30, %v3553_v50  ;;  %v768_v37 = vadd.s32 %v3504_v59, %v3510_v15  ;;  %v934_v34 = vand.u32 31, %v932_v58 }
 0x26e   :  { %v891_v13 = vor.u32 %v890_v25, %v889_v31  ;;  %v894_v44 = vshll.u32 %v893_v36, 23  ;;  %v2583_v43 = vadd.s32 4294967294, %v780_v26  ;;  %v1084_v28 = vadd.s32 %v1083_v21, %v1079_v22 }
 0x26f   :  { %v3574_v20 = vshrl.u32 %v932_v58, 5  ;;  %v3576_v38 = vshll.u32 %v928_v24, 8  ;;  %v902_v46 = vsub.s32 4, %v3515_v42  ;;  %v935_v47 = vsub.s32 32, %v934_v34 }
 0x270   :  { %v895_v35 = vor.u32 4788187, %v894_v44  ;;  %vm2584_vm10 = vcmp.lt.s32.totalorder %v2583_v43, 0  ;;  %v1085_v40 = vadd.s32 536870912, %v1084_v28  ;;  %v3581_v49 = vsel %vm714_vm9, %v798_v63, %v774_v39 }
 0x271   :  { %v898_v57 = vcvt.s32.f32 %v891_v13  ;;  %v783_v59 = vsel %vm2584_vm10, 0, %v2583_v43  ;;  %v937_v15 = vshll.u32 %v2962_v1, %v934_v34  ;;  %v940_v2 = vshll.u32 %v2963_v3, %v934_v34 }
 0x272   :  { %v896_v27 = vand.u32 2147483647, %v895_v35  ;;  %v784_v19 = vsub.s32 32, %v783_v59  ;;  %v788_v29 = vsub.s32 4294967266, %v783_v59  ;;  %v3584_v32 = vshrl.u32 %v1085_v40, 30 }
 0x273   :  { %v785_v7 = vshll.u32 %v3548_v4, %v783_v59  ;;  %v938_v51 = vshrl.u32 %v2963_v3, %v935_v47  ;;  %v941_v18 = vshrl.u32 %v2964_v6, %v935_v47  ;;  %vm818_vm11 = vcmp.lt.s32.totalorder %v3410_v48, 0 }
 0x274   :  { %v899_v56 = vmul.f32 %v898_v57, %v896_v27  ;;  %v786_v39 = vshrl.u32 %v768_v37, %v784_v19  ;;  %v789_v11 = vadd.s32 127, %v788_v29  ;;  %v1087_v50 = vshll.u32 %v3584_v32, 30 }
 0x275   :  { %v944_v5 = vshrl.u32 %v2965_v8, %v935_v47  ;;  %v939_v16 = vor.u32 %v938_v51, %v937_v15  ;;  %v942_v60 = vor.u32 %v941_v18, %v940_v2  ;;  %v943_v61 = vshll.u32 %v2964_v6, %v934_v34 }
 0x276   :  { %vm952_vm12 = vcmp.lt.s32.totalorder %v3574_v20, 1  ;;  %v787_v55 = vor.u32 %v786_v39, %v785_v7  ;;  %v790_v4 = vshll.u32 %v789_v11, 23  ;;  %v3595_v12 = vsub.s32 %v1084_v28, %v1087_v50 }
 0x277   :  { %v946_v52 = vshll.u32 %v2965_v8, %v934_v34  ;;  %v945_v31 = vor.u32 %v944_v5, %v943_v61  ;;  %v947_v33 = vshrl.u32 %v2966_v10, %v935_v47  ;;  %v949_v22 = vshll.u32 %v2966_v10, %v934_v34 }
 0x278   :  { %v950_v24 = vshrl.u32 %v2967_v17, %v935_v47  ;;  %v900_v25 = vxor.u32 2147483648, %v899_v56  ;;  %v791_v36 = vor.u32 4788187, %v790_v4  ;;  %v1090_v30 = vsub.s32 0, %v3595_v12 }
 0x279   :  { %v936_v26 = vshrl.u32 %v2962_v1, %v935_v47  ;;  %v794_v58 = vcvt.s32.f32 %v787_v55  ;;  %v948_v63 = vor.u32 %v947_v33, %v946_v52  ;;  %vm954_vm13 = vcmp.lt.s32.totalorder %v3574_v20, 3 }
 0x27a   :  { %v951_v13 = vor.u32 %v950_v24, %v949_v22  ;;  %v792_v44 = vand.u32 2147483647, %v791_v36  ;;  %v2594_v21 = vmin.u32 %v1090_v30, %v3595_v12  ;;  %vm955_vm15 = vcmp.lt.s32.totalorder %v3574_v20, 4 }
 0x27b   :  { %v960_v37 = vsel %vm952_vm12, %v939_v16, %v942_v60  ;;  %v957_v43 = vsel %vm955_vm15, %v945_v31, 2102212464  ;;  %v961_v28 = vsel %vm955_vm15, %v948_v63, 920167782  ;;  %v964_v34 = vsel %vm952_vm12, %v942_v60, %v945_v31 }
 0x27c   :  { %v965_v35 = vsel %vm955_vm15, %v951_v13, 1326507024  ;;  %v795_v40 = vmul.f32 %v794_v58, %v792_v44  ;;  %v1092_v47 = vclz %v2594_v21  ;;  %vm953_vm2 = vcmp.lt.s32.totalorder %v3574_v20, 2 }
 0x27d   :  { %v962_v27 = vsel %vm954_vm13, %v945_v31, %v961_v28  ;;  %v901_v57 = vsel %vm818_vm11, %v900_v25, %v899_v56  ;;  %v956_v59 = vsel %vm952_vm12, %v936_v26, %v939_v16  ;;  %v966_v19 = vsel %vm954_vm13, %v948_v63, %v965_v35 }
 0x27e   :  { %v963_v15 = vsel %vm953_vm2, %v960_v37, %v962_v27  ;;  %v796_v29 = vxor.u32 2147483648, %v795_v40  ;;  %v2595_v2 = vadd.s32 4294967294, %v1092_v47  ;;  %v958_v7 = vsel %vm954_vm13, %v942_v60, %v957_v43 }
 0x27f   :  { %v967_v51 = vsel %vm953_vm2, %v964_v34, %v966_v19  ;;  %v3630_v39 = vmul.u32.u64.low %v3576_v38, %v963_v15  ;;  %v3631_v11 = vmul.u32.u64.high %v3576_v38, %v963_v15, %v3630_v39  ;;  %vm3638_vm4 = vcmp.le.f32.partialorder %v712_v62, 0.7853982 }
 0x280   :  { %v3626_v18 = vmul.u32.u64.low %v3576_v38, %v967_v51  ;;  %v3627_v56 = vmul.u32.u64.high %v3576_v38, %v967_v51, %v3626_v18  ;;  %v797_v50 = vsel %vm714_vm9, %v796_v29, %v795_v40  ;;  %vm2596_vm3 = vcmp.lt.s32.totalorder %v2595_v2, 0 }
 0x281   :  { %v1095_v16 = vsel %vm2596_vm3, 0, %v2595_v2  ;;  %v959_v60 = vsel %vm953_vm2, %v956_v59, %v958_v7  ;;  %v800_v61 = vsel %vm3638_vm4, %v3412_v53, %v797_v50  ;;  %vm3649_vm5 = vcmp.le.f32.partialorder %v816_v54, 0.7853982 }
 0x282   :  { %v1100_v4 = vsub.s32 4294967266, %v1095_v16  ;;  %v801_v62 = vsel %vm3638_vm4, 0, %v3581_v49  ;;  %2884 = vcosq.f32 %v800_v61  ;;  %v904_v20 = vsel %vm3649_vm5, %v3410_v48, %v901_v57 }
 0x283   :  { %vm977_vm6 = vc.u32 %v3627_v56, %v3630_v39  ;;  %v978_v52 = vadd.s32 1, %v3631_v11  ;;  %2886 = vsinq.f32 %v800_v61  ;;  %v903_v54 = vsel %vm818_vm11, %v902_v46, %v3515_v42 }
 0x284   :  { %v1096_v31 = vsub.s32 32, %v1095_v16  ;;  %v1101_v33 = vadd.s32 127, %v1100_v4  ;;  %v975_v49 = vmul.u32 %v3576_v38, %v959_v60  ;;  %v1080_v22 = vadd.s32 %v3552_v23, %v3559_v14 }
 0x285   :  { %v979_v24 = vsel %vm977_vm6, %v978_v52, %v3631_v11  ;;  %v805_v25 = vadd.s32 3, %v801_v62  ;;  %2888 = vcosq.f32 %v904_v20  ;;  %v905_v26 = vsel %vm3649_vm5, 0, %v903_v54 }
 0x286   :  { %v1102_v36 = vshll.u32 %v1101_v33, 23  ;;  %v980_v30 = vadd.s32 %v979_v24, %v975_v49  ;;  %2890 = vsinq.f32 %v904_v20  ;;  %v1098_v58 = vshrl.u32 %v1080_v22, %v1096_v31 }
 0x287   :  { %v909_v42 = vadd.s32 3, %v905_v26  ;;  %v1097_v46 = vshll.u32 %v3595_v12, %v1095_v16  ;;  %v806_v44 = vand.u32 3, %v805_v25  ;;  %vm804_vm10 = vweird.f32 %v3412_v53 }
 0x288   :  { %v981_v63 = vadd.s32 536870912, %v980_v30  ;;  %v1103_v13 = vor.u32 4788187, %v1102_v36  ;;  %vm908_vm15 = vweird.f32 %v3410_v48  ;;  %vm1026_vm3 = vcmp.lt.s32.totalorder %v3420_v0, 0 }
 0x289   :  { %v1099_v14 = vor.u32 %v1098_v58, %v1097_v46  ;;  %v910_v28 = vand.u32 3, %v909_v42  ;;  %vm811_vm7 = vcmp.eq.s32.totalorder %v806_v44, 2  ;;  %vm807_vm8 = vcmp.lt.s32.totalorder %v806_v44, 2 }
 0x28a   :  { %v3674_v38 = vshrl.u32 %v981_v63, 30  ;;  %v1104_v34 = vand.u32 2147483647, %v1103_v13  ;;  %vm808_vm9 = vcmp.eq.s32.totalorder %v806_v44, 0  ;;  %v976_v20 = vadd.s32 %v3630_v39, %v3627_v56 }
 0x28b   :  { %v1106_v57 = vcvt.s32.f32 %v1099_v14  ;;  %vm915_vm11 = vcmp.eq.s32.totalorder %v910_v28, 2  ;;  %vm912_vm12 = vcmp.eq.s32.totalorder %v910_v28, 0  ;;  %vm911_vm13 = vcmp.lt.s32.totalorder %v910_v28, 2 }
 0x28c   :  { %v2885_v23 = vpop.eup %2884  ;;  %v983_v21 = vshll.u32 %v3674_v38, 30  ;;  %vm3686_vm4 = vcmp.le.f32.partialorder %v1024_v9, 0.7853982  ;;  %v1110_v36 = vsub.s32 4, %v3584_v32  ;;  %v1006_v58 = vsub.s32 4, %v3674_v38 }
 0x28d   :  { %v2887_v37 = vpop.eup %2886  ;;  %v812_v43 = vxor.u32 2147483648, %v2885_v23  ;;  %v1107_v7 = vmul.f32 %v1106_v57, %v1104_v34  ;;  %vm922_vm5 = vcmp.lt.s32.totalorder %v3425_v41, 0  ;;  %vm921_vm6 = vcmp.le.f32.partialorder %v920_v45, 0.7853982 }
 0x28e   :  { %v984_v35 = vsub.s32 %v980_v30, %v983_v21  ;;  %v809_v40 = vxor.u32 2147483648, %v2887_v37  ;;  %v1111_v9 = vsel %vm1026_vm3, %v1110_v36, %v3584_v32  ;;  %v1007_v13 = vsel %vm922_vm5, %v1006_v58, %v3674_v38 }
 0x28f   :  { %v2889_v47 = vpop.eup %2888  ;;  %v813_v27 = vsel %vm811_vm7, %v812_v43, %v2887_v37  ;;  %v1108_v61 = vxor.u32 2147483648, %v1107_v7  ;;  %v1113_v42 = vsel %vm3686_vm4, 0, %v1111_v9  ;;  %v1009_v21 = vsel %vm921_vm6, 0, %v1007_v13 }
 0x290   :  { %v2891_v12 = vpop.eup %2890  ;;  %v986_v59 = vsub.s32 0, %v984_v35  ;;  %v810_v15 = vsel %vm808_vm9, %v2885_v23, %v809_v40  ;;  %v916_v19 = vxor.u32 2147483648, %v2889_v47  ;;  %v1117_v23 = vadd.s32 3, %v1113_v42 }
 0x291   :  { %v814_v29 = vsel %vm807_vm8, %v810_v15, %v813_v27  ;;  %v913_v2 = vxor.u32 2147483648, %v2891_v12  ;;  %v1109_v62 = vsel %vm1026_vm3, %v1108_v61, %v1107_v7  ;;  %v1013_v43 = vadd.s32 3, %v1009_v21 }
 0x292   :  { %v2590_v51 = vmin.u32 %v986_v59, %v984_v35  ;;  %v917_v18 = vsel %vm915_vm11, %v916_v19, %v2891_v12  ;;  %v815_v11 = vsel %vm804_vm10, nan, %v814_v29  ;;  %v1112_v22 = vsel %vm3686_vm4, %v3420_v0, %v1109_v62 }
 0x293   :  { %v914_v50 = vsel %vm912_vm12, %v2889_v47, %v913_v2  ;;  %2892 = vcosq.f32 %v1112_v22  ;;  %v1118_v37 = vand.u32 3, %v1117_v23  ;;  %vm1116_vm12 = vweird.f32 %v3420_v0  ;;  %v1131_v0 = vld [vmem:[%s4371_s3 + $0x18] sm:$0xff] }
 0x294   :  { %v988_v5 = vclz %v2590_v51  ;;  %v918_v16 = vsel %vm911_vm13, %v914_v50, %v917_v18  ;;  %2894 = vsinq.f32 %v1112_v22  ;;  %v1129_v51 = vld [vmem:[%s4371_s3 + $0x8] sm:$0xff]  ;;  %v1130_v18 = vld [vmem:[%s4371_s3 + $0x10] sm:$0xff]  ;;  %v1139_v50 = vpop.permute.xlu0 %1138 }
 0x295   :  { %v919_v60 = vsel %vm908_vm15, nan, %v918_v16  ;;  %vm1120_vm7 = vcmp.eq.s32.totalorder %v1118_v37, 0  ;;  %vm1123_vm8 = vcmp.eq.s32.totalorder %v1118_v37, 2  ;;  %vm1119_vm9 = vcmp.lt.s32.totalorder %v1118_v37, 2 }
 0x296   :  { %v2591_v55 = vadd.s32 4294967294, %v988_v5  ;;  %v2762_v4 = vpack.c.bf16 %v919_v60, %v815_v11  ;;  %vm1012_vm15 = vweird.f32 %v3425_v41 }
 0x298   :  { %vm2592_vm2 = vcmp.lt.s32.totalorder %v2591_v55, 0  ;;  %2763 = vmatprep.subr.bf16.mxu0 %v2762_v4  ;;  %v1149_v22 = vpop.permute.xlu0 %1148 }
 0x299   :  { %v991_v53 = vsel %vm2592_vm2, 0, %v2591_v55  ;;  %2765 = vmatpush3.bf16.msra.mxu0 %v2762_v4 }
 0x29a   :  { %v992_v52 = vsub.s32 32, %v991_v53  ;;  %v996_v54 = vsub.s32 4294967266, %v991_v53  ;;  %v993_v31 = vshll.u32 %v984_v35, %v991_v53  ;;  %v1014_v35 = vand.u32 3, %v1013_v43 }
 0x29c   :  { %v994_v33 = vshrl.u32 %v976_v20, %v992_v52  ;;  %v997_v49 = vadd.s32 127, %v996_v54  ;;  %vm1019_vm10 = vcmp.eq.s32.totalorder %v1014_v35, 2  ;;  %vm1016_vm11 = vcmp.eq.s32.totalorder %v1014_v35, 0 }
 0x29d   :  { %v2893_v14 = vpop.eup %2892  ;;  %vm1015_vm13 = vcmp.lt.s32.totalorder %v1014_v35, 2 }
 0x29e   :  { %v995_v24 = vor.u32 %v994_v33, %v993_v31  ;;  %v998_v25 = vshll.u32 %v997_v49, 23  ;;  %v2895_v32 = vpop.eup %2894  ;;  %v1124_v34 = vxor.u32 2147483648, %v2893_v14 }
 0x29f   :  { %v1121_v28 = vxor.u32 2147483648, %v2895_v32 }
 0x2a0   :  { %v999_v56 = vor.u32 4788187, %v998_v25  ;;  %v1002_v30 = vcvt.s32.f32 %v995_v24  ;;  %v1125_v45 = vsel %vm1123_vm8, %v1124_v34, %v2895_v32 }
 0x2a1   :  { %v1122_v40 = vsel %vm1120_vm7, %v2893_v14, %v1121_v28 }
 0x2a2   :  { %v1000_v39 = vand.u32 2147483647, %v999_v56  ;;  %v1126_v12 = vsel %vm1119_vm9, %v1122_v40, %v1125_v45 }
 0x2a3   :  { %v1127_v19 = vsel %vm1116_vm12, nan, %v1126_v12 }
 0x2a4   :  { %v1003_v26 = vmul.f32 %v1002_v30, %v1000_v39 }
 0x2a6   :  { %v1004_v63 = vxor.u32 2147483648, %v1003_v26 }
 0x2a8   :  { %v1005_v46 = vsel %vm922_vm5, %v1004_v63, %v1003_v26 }
 0x2a9   :  { %v1008_v44 = vsel %vm921_vm6, %v3425_v41, %v1005_v46  ;;  %v1144_v41 = vpop.permute.xlu1 %1143  ;;  %v1669_v46 = vld [vmem:[%s4372_s4] sm:$0xff] }
 0x2aa   :  { %2896 = vcosq.f32 %v1008_v44  ;;  %2727 = vmatprep.mubr.msk.f32.mxu1 %vm614_vm14, %v1669_v46 }
 0x2ab   :  { %2898 = vsinq.f32 %v1008_v44 }
 0x2ad   :  { %v1154_v4 = vpop.permute.xlu1 %1153 }
 0x2b4   :  { %v2897_v47 = vpop.eup %2896 }
 0x2b5   :  { %v2899_v38 = vpop.eup %2898  ;;  %v1020_v27 = vxor.u32 2147483648, %v2897_v47 }
 0x2b6   :  { %v1017_v57 = vxor.u32 2147483648, %v2899_v38 }
 0x2b7   :  { %v1021_v59 = vsel %vm1019_vm10, %v1020_v27, %v2899_v38 }
 0x2b8   :  { %v1018_v15 = vsel %vm1016_vm11, %v2897_v47, %v1017_v57 }
 0x2b9   :  { %v1022_v29 = vsel %vm1015_vm13, %v1018_v15, %v1021_v59 }
 0x2ba   :  { %v1023_v2 = vsel %vm1012_vm15, nan, %v1022_v29 }
 0x2bb   :  { %v2766_v7 = vpack.c.bf16 %v1127_v19, %v1023_v2 }
 0x2bd   :  { %2767 = vmatprep.subr.bf16.mxu0 %v2766_v7 }
 0x2be   :  { %2769 = vmatpush3.bf16.msra.mxu0 %v2766_v7 }
 0x2c1   :  { %2714 = vmatmul.mubr.msk.f32.vlgmr.msra.gmra.mrb[0].mxu0 %vm614_vm14, %v1129_v51 }
 0x2c2   :  { %2716 = vmatprep.mubr.msk.f32.mxu0 %vm614_vm14, %v1130_v18 }
 0x2c5   :  { %2717 = vmatmul.mubr.msk.f32.gmra.mrb[2].mxu0 %vm614_vm14, %v1131_v0 }
 0x394   :  { %v2715_v11 = vpop.f32.mrb[0].mxu0 }
 0x395   :  { %v3719_v5 = vadd.f32 %v2715_v11, %v1144_v41  ;;  %v1234_v16 = vpop.f32.mrb[1].mxu0 }
 0x396   :  { %v3721_v60 = vadd.f32 %v1234_v16, %v1139_v50 }
 0x397   :  { %v1357_v61 = vand.u32 2147483647, %v3719_v5  ;;  %v1360_v55 = vand.u32 2139095040, %v3719_v5 }
 0x398   :  { %v1253_v53 = vand.u32 2147483647, %v3721_v60  ;;  %v1256_v62 = vand.u32 2139095040, %v3721_v60  ;;  %v2718_v20 = vpop.f32.mrb[2].mxu0 }
 0x399   :  { %v1361_v52 = vshrl.u32 %v1360_v55, 23  ;;  %v1364_v54 = vand.u32 8388607, %v1357_v61  ;;  %v3729_v48 = vadd.f32 %v2718_v20, %v1154_v4  ;;  %v1244_v31 = vpop.f32.mrb[3].mxu0 }
 0x39a   :  { %v1257_v33 = vshrl.u32 %v1256_v62, 23  ;;  %v1260_v49 = vand.u32 8388607, %v1253_v53  ;;  %v3735_v39 = vadd.f32 %v1244_v31, %v1149_v22 }
 0x39b   :  { %v2605_v24 = vadd.s32 4294967169, %v1361_v52  ;;  %v1565_v25 = vand.u32 2147483647, %v3729_v48  ;;  %v1568_v56 = vand.u32 2139095040, %v3729_v48  ;;  %v1365_v30 = vor.u32 8388608, %v1364_v54 }
 0x39c   :  { %v2601_v36 = vadd.s32 4294967169, %v1257_v33  ;;  %v1261_v26 = vor.u32 8388608, %v1260_v49  ;;  %v1461_v23 = vand.u32 2147483647, %v3735_v39 }
 0x39d   :  { %v1367_v9 = vadd.s32 1, %v2605_v24  ;;  %v1569_v63 = vshrl.u32 %v1568_v56, 23  ;;  %v3739_v42 = vand.u32 8388607, %v1565_v25  ;;  %v3746_v21 = vshll.u32 %v1365_v30, 8 }
 0x39e   :  { %v1263_v58 = vadd.s32 1, %v2601_v36  ;;  %v3750_v34 = vshll.u32 %v1261_v26, 8 }
 0x39f   :  { %vm1368_vm2 = vcmp.gt.s32.totalorder %v1367_v9, 0  ;;  %v2613_v44 = vadd.s32 4294967169, %v1569_v63  ;;  %v1573_v35 = vor.u32 8388608, %v3739_v42 }
 0x3a0   :  { %v1369_v13 = vsel %vm1368_vm2, %v1367_v9, 0  ;;  %vm1264_vm3 = vcmp.gt.s32.totalorder %v1263_v58, 0 }
 0x3a1   :  { %v1370_v14 = vshrl.u32 %v1369_v13, 5  ;;  %v1371_v32 = vand.u32 31, %v1369_v13  ;;  %v1265_v37 = vsel %vm1264_vm3, %v1263_v58, 0  ;;  %v3755_v38 = vadd.s32 1, %v2613_v44 }
 0x3a2   :  { %v3748_v43 = vshrl.u32 %v1265_v37, 5  ;;  %v1267_v28 = vand.u32 31, %v1265_v37 }
 0x3a3   :  { %v1372_v40 = vsub.s32 32, %v1371_v32  ;;  %v1374_v45 = vshll.u32 %v2962_v1, %v1371_v32  ;;  %v1377_v47 = vshll.u32 %v2963_v3, %v1371_v32  ;;  %v1380_v27 = vshll.u32 %v2964_v6, %v1371_v32 }
 0x3a4   :  { %v1383_v12 = vshll.u32 %v2965_v8, %v1371_v32  ;;  %v1386_v57 = vshll.u32 %v2966_v10, %v1371_v32  ;;  %vm1389_vm4 = vcmp.lt.s32.totalorder %v1370_v14, 1  ;;  %vm1390_vm5 = vcmp.lt.s32.totalorder %v1370_v14, 2 }
 0x3a5   :  { %v1375_v59 = vshrl.u32 %v2963_v3, %v1372_v40  ;;  %v1378_v15 = vshrl.u32 %v2964_v6, %v1372_v40  ;;  %v1381_v19 = vshrl.u32 %v2965_v8, %v1372_v40  ;;  %v1373_v29 = vshrl.u32 %v2962_v1, %v1372_v40 }
 0x3a6   :  { %v1384_v2 = vshrl.u32 %v2966_v10, %v1372_v40  ;;  %v1387_v7 = vshrl.u32 %v2967_v17, %v1372_v40  ;;  %vm1391_vm6 = vcmp.lt.s32.totalorder %v1370_v14, 3  ;;  %v1268_v41 = vsub.s32 32, %v1267_v28 }
 0x3a7   :  { %v1376_v51 = vor.u32 %v1375_v59, %v1374_v45  ;;  %v1379_v18 = vor.u32 %v1378_v15, %v1377_v47  ;;  %v1382_v0 = vor.u32 %v1381_v19, %v1380_v27  ;;  %vm1392_vm7 = vcmp.lt.s32.totalorder %v1370_v14, 4 }
 0x3a8   :  { %v1385_v11 = vor.u32 %v1384_v2, %v1383_v12  ;;  %v1388_v50 = vor.u32 %v1387_v7, %v1386_v57  ;;  %v1270_v16 = vshll.u32 %v2962_v1, %v1267_v28  ;;  %v1273_v33 = vshll.u32 %v2963_v3, %v1267_v28 }
 0x3a9   :  { %v1393_v55 = vsel %vm1389_vm4, %v1373_v29, %v1376_v51  ;;  %v1394_v4 = vsel %vm1392_vm7, %v1382_v0, 2102212464  ;;  %v1397_v62 = vsel %vm1389_vm4, %v1376_v51, %v1379_v18  ;;  %v1401_v20 = vsel %vm1389_vm4, %v1379_v18, %v1382_v0 }
 0x3aa   :  { %v1395_v52 = vsel %vm1391_vm6, %v1379_v18, %v1394_v4  ;;  %v1398_v54 = vsel %vm1392_vm7, %v1385_v11, 920167782  ;;  %v1402_v31 = vsel %vm1392_vm7, %v1388_v50, 1326507024  ;;  %v1269_v24 = vshrl.u32 %v2962_v1, %v1268_v41 }
 0x3ab   :  { %v1399_v49 = vsel %vm1391_vm6, %v1382_v0, %v1398_v54  ;;  %v1403_v22 = vsel %vm1391_vm6, %v1385_v11, %v1402_v31  ;;  %v1271_v36 = vshrl.u32 %v2963_v3, %v1268_v41  ;;  %v1396_v56 = vsel %vm1390_vm5, %v1393_v55, %v1395_v52 }
 0x3ac   :  { %v1400_v30 = vsel %vm1390_vm5, %v1397_v62, %v1399_v49  ;;  %v1404_v9 = vsel %vm1390_vm5, %v1401_v20, %v1403_v22  ;;  %v1274_v26 = vshrl.u32 %v2964_v6, %v1268_v41  ;;  %v1276_v37 = vshll.u32 %v2964_v6, %v1267_v28 }
 0x3ad   :  { %v3781_v58 = vmul.u32.u64.low %v3746_v21, %v1404_v9  ;;  %v3782_v63 = vmul.u32.u64.high %v3746_v21, %v1404_v9, %v3781_v58  ;;  %v3785_v46 = vmul.u32.u64.low %v3746_v21, %v1400_v30  ;;  %v3786_v13 = vmul.u32.u64.high %v3746_v21, %v1400_v30, %v3785_v46 }
 0x3ae   :  { %v1272_v44 = vor.u32 %v1271_v36, %v1270_v16  ;;  %v1275_v32 = vor.u32 %v1274_v26, %v1273_v33  ;;  %v1277_v40 = vshrl.u32 %v2965_v8, %v1268_v41  ;;  %v1412_v45 = vmul.u32 %v3746_v21, %v1396_v56 }
 0x3af   :  { %v1279_v14 = vshll.u32 %v2965_v8, %v1267_v28  ;;  %v1280_v47 = vshrl.u32 %v2966_v10, %v1268_v41  ;;  %v1283_v27 = vshrl.u32 %v2967_v17, %v1268_v41  ;;  %v1282_v57 = vshll.u32 %v2966_v10, %v1267_v28 }
 0x3b0   :  { %v1278_v12 = vor.u32 %v1277_v40, %v1276_v37  ;;  %vm1285_vm8 = vcmp.lt.s32.totalorder %v3748_v43, 1  ;;  %vm1286_vm9 = vcmp.lt.s32.totalorder %v3748_v43, 2  ;;  %vm1414_vm10 = vc.u32 %v3782_v63, %v3785_v46 }
 0x3b1   :  { %v1415_v59 = vadd.s32 1, %v3786_v13  ;;  %v1281_v15 = vor.u32 %v1280_v47, %v1279_v14  ;;  %vm1287_vm11 = vcmp.lt.s32.totalorder %v3748_v43, 3  ;;  %v1284_v21 = vor.u32 %v1283_v27, %v1282_v57 }
 0x3b2   :  { %vm1288_vm12 = vcmp.lt.s32.totalorder %v3748_v43, 4  ;;  %v1289_v19 = vsel %vm1285_vm8, %v1269_v24, %v1272_v44  ;;  %v1293_v29 = vsel %vm1285_vm8, %v1272_v44, %v1275_v32  ;;  %v1297_v51 = vsel %vm1285_vm8, %v1275_v32, %v1278_v12 }
 0x3b3   :  { %v1416_v2 = vsel %vm1414_vm10, %v1415_v59, %v3786_v13  ;;  %v1290_v7 = vsel %vm1288_vm12, %v1278_v12, 2102212464  ;;  %v1294_v28 = vsel %vm1288_vm12, %v1281_v15, 920167782  ;;  %v1298_v11 = vsel %vm1288_vm12, %v1284_v21, 1326507024 }
 0x3b4   :  { %v1417_v18 = vadd.s32 %v1416_v2, %v1412_v45  ;;  %v1291_v0 = vsel %vm1287_vm11, %v1275_v32, %v1290_v7  ;;  %v1295_v41 = vsel %vm1287_vm11, %v1278_v12, %v1294_v28  ;;  %v1299_v16 = vsel %vm1287_vm11, %v1281_v15, %v1298_v11 }
 0x3b5   :  { %v1296_v50 = vsel %vm1286_vm9, %v1293_v29, %v1295_v41  ;;  %vm1576_vm13 = vcmp.gt.s32.totalorder %v3755_v38, 0  ;;  %v1464_v55 = vand.u32 2139095040, %v3735_v39  ;;  %v1300_v62 = vsel %vm1286_vm9, %v1297_v51, %v1299_v16 }
 0x3b6   :  { %v1418_v4 = vadd.s32 536870912, %v1417_v18  ;;  %v3809_v20 = vmul.u32.u64.low %v3750_v34, %v1296_v50  ;;  %v3810_v52 = vmul.u32.u64.high %v3750_v34, %v1296_v50, %v3809_v20  ;;  %v1292_v54 = vsel %vm1286_vm9, %v1289_v19, %v1291_v0 }
 0x3b7   :  { %v3816_v31 = vmul.u32.u64.low %v3750_v34, %v1300_v62  ;;  %v3817_v33 = vmul.u32.u64.high %v3750_v34, %v1300_v62, %v3816_v31  ;;  %v1577_v49 = vsel %vm1576_vm13, %v3755_v38, 0  ;;  %v3823_v36 = vadd.s32 %v3785_v46, %v3782_v63 }
 0x3b8   :  { %v3820_v22 = vshrl.u32 %v1418_v4, 30  ;;  %v1579_v24 = vand.u32 31, %v1577_v49  ;;  %v3827_v56 = vshll.u32 %v1573_v35, 8  ;;  %v1465_v30 = vshrl.u32 %v1464_v55, 23 }
 0x3b9   :  { %v3831_v43 = vand.u32 8388607, %v1461_v23  ;;  %v1308_v26 = vmul.u32 %v3750_v34, %v1292_v54  ;;  %v1311_v38 = vadd.s32 1, %v3810_v52  ;;  %vm1310_vm15 = vc.u32 %v3817_v33, %v3809_v20 }
 0x3ba   :  { %v1420_v9 = vshll.u32 %v3820_v22, 30  ;;  %v1580_v58 = vsub.s32 32, %v1579_v24  ;;  %v1578_v63 = vshrl.u32 %v1577_v49, 5  ;;  %v1582_v42 = vshll.u32 %v2962_v1, %v1579_v24 }
 0x3bb   :  { %v1585_v35 = vshll.u32 %v2963_v3, %v1579_v24  ;;  %v1312_v13 = vsel %vm1310_vm15, %v1311_v38, %v3810_v52  ;;  %v1588_v32 = vshll.u32 %v2964_v6, %v1579_v24  ;;  %v1591_v45 = vshll.u32 %v2965_v8, %v1579_v24 }
 0x3bc   :  { %v3840_v46 = vsub.s32 %v1417_v18, %v1420_v9  ;;  %v1583_v44 = vshrl.u32 %v2963_v3, %v1580_v58  ;;  %v1313_v34 = vadd.s32 %v1312_v13, %v1308_v26  ;;  %v1586_v37 = vshrl.u32 %v2964_v6, %v1580_v58 }
 0x3bd   :  { %v1589_v40 = vshrl.u32 %v2965_v8, %v1580_v58  ;;  %v1592_v27 = vshrl.u32 %v2966_v10, %v1580_v58  ;;  %v1594_v12 = vshll.u32 %v2966_v10, %v1579_v24  ;;  %v1595_v21 = vshrl.u32 %v2967_v17, %v1580_v58 }
 0x3be   :  { %v1423_v14 = vsub.s32 0, %v3840_v46  ;;  %v1584_v47 = vor.u32 %v1583_v44, %v1582_v42  ;;  %v1314_v57 = vadd.s32 536870912, %v1313_v34  ;;  %v1587_v59 = vor.u32 %v1586_v37, %v1585_v35 }
 0x3bf   :  { %v1590_v15 = vor.u32 %v1589_v40, %v1588_v32  ;;  %v1581_v29 = vshrl.u32 %v2962_v1, %v1580_v58  ;;  %v1593_v2 = vor.u32 %v1592_v27, %v1591_v45  ;;  %v2609_v7 = vadd.s32 4294967169, %v1465_v30 }
 0x3c0   :  { %v2606_v19 = vmin.u32 %v1423_v14, %v3840_v46  ;;  %v3854_v28 = vshrl.u32 %v1314_v57, 30  ;;  %v1596_v51 = vor.u32 %v1595_v21, %v1594_v12  ;;  %vm1597_vm2 = vcmp.lt.s32.totalorder %v1578_v63, 1 }
 0x3c1   :  { %vm1600_vm3 = vcmp.lt.s32.totalorder %v1578_v63, 4  ;;  %vm1598_vm4 = vcmp.lt.s32.totalorder %v1578_v63, 2  ;;  %v1605_v41 = vsel %vm1597_vm2, %v1584_v47, %v1587_v59  ;;  %vm1599_vm5 = vcmp.lt.s32.totalorder %v1578_v63, 3 }
 0x3c2   :  { %v1425_v18 = vclz %v2606_v19  ;;  %v1602_v0 = vsel %vm1600_vm3, %v1590_v15, 2102212464  ;;  %v1316_v11 = vshll.u32 %v3854_v28, 30  ;;  %v1606_v50 = vsel %vm1600_vm3, %v1593_v2, 920167782 }
 0x3c3   :  { %v1609_v16 = vsel %vm1597_vm2, %v1587_v59, %v1590_v15  ;;  %v1601_v4 = vsel %vm1597_vm2, %v1581_v29, %v1584_v47  ;;  %v1607_v62 = vsel %vm1599_vm5, %v1590_v15, %v1606_v50  ;;  %v1610_v52 = vsel %vm1600_vm3, %v1596_v51, 1326507024 }
 0x3c4   :  { %v2607_v55 = vadd.s32 4294967294, %v1425_v18  ;;  %v3857_v54 = vsub.s32 %v1313_v34, %v1316_v11  ;;  %v1603_v31 = vsel %vm1599_vm5, %v1587_v59, %v1602_v0  ;;  %v1608_v49 = vsel %vm1598_vm4, %v1605_v41, %v1607_v62 }
 0x3c5   :  { %v1611_v24 = vsel %vm1599_vm5, %v1593_v2, %v1610_v52  ;;  %v3862_v9 = vmul.u32.u64.low %v3827_v56, %v1608_v49  ;;  %v3863_v26 = vmul.u32.u64.high %v3827_v56, %v1608_v49, %v3862_v9  ;;  %v1604_v32 = vsel %vm1598_vm4, %v1601_v4, %v1603_v31 }
 0x3c6   :  { %vm2608_vm6 = vcmp.lt.s32.totalorder %v2607_v55, 0  ;;  %v1612_v30 = vsel %vm1598_vm4, %v1609_v16, %v1611_v24  ;;  %v1319_v58 = vsub.s32 0, %v3857_v54  ;;  %v1471_v34 = vadd.s32 1, %v2609_v7 }
 0x3c7   :  { %v1428_v38 = vsel %vm2608_vm6, 0, %v2607_v55  ;;  %v3868_v42 = vmul.u32.u64.low %v3827_v56, %v1612_v30  ;;  %v3869_v35 = vmul.u32.u64.high %v3827_v56, %v1612_v30, %v3868_v42  ;;  %v1469_v45 = vor.u32 8388608, %v3831_v43 }
 0x3c8   :  { %v1429_v13 = vsub.s32 32, %v1428_v38  ;;  %v1433_v44 = vsub.s32 4294967266, %v1428_v38  ;;  %v1430_v37 = vshll.u32 %v3840_v46, %v1428_v38  ;;  %v2602_v40 = vmin.u32 %v1319_v58, %v3857_v54 }
 0x3c9   :  { %v1623_v27 = vadd.s32 1, %v3863_v26  ;;  %vm1472_vm7 = vcmp.gt.s32.totalorder %v1471_v34, 0  ;;  %v1620_v57 = vmul.u32 %v3827_v56, %v1604_v32  ;;  %vm1622_vm8 = vc.u32 %v3869_v35, %v3862_v9 }
 0x3ca   :  { %v1431_v14 = vshrl.u32 %v3823_v36, %v1429_v13  ;;  %v1434_v47 = vadd.s32 127, %v1433_v44  ;;  %v1321_v12 = vclz %v2602_v40  ;;  %v1473_v63 = vsel %vm1472_vm7, %v1471_v34, 0 }
 0x3cb   :  { %v1309_v46 = vadd.s32 %v3809_v20, %v3817_v33  ;;  %v1624_v43 = vsel %vm1622_vm8, %v1623_v27, %v3863_v26  ;;  %vm1359_vm9 = vcmp.lt.s32.totalorder %v3719_v5, 0  ;;  %v3884_v19 = vshrl.u32 %v1473_v63, 5 }
 0x3cc   :  { %v1432_v59 = vor.u32 %v1431_v14, %v1430_v37  ;;  %v1435_v15 = vshll.u32 %v1434_v47, 23  ;;  %v2603_v36 = vadd.s32 4294967294, %v1321_v12  ;;  %v1625_v21 = vadd.s32 %v1624_v43, %v1620_v57 }
 0x3cd   :  { %v1475_v29 = vand.u32 31, %v1473_v63  ;;  %vm3888_vm10 = vcmp.le.f32.partialorder %v1357_v61, 0.7853982  ;;  %v3892_v7 = vshll.u32 %v1469_v45, 8  ;;  %v1339_v20 = vsub.s32 4, %v3854_v28 }
 0x3ce   :  { %v1436_v2 = vor.u32 4788187, %v1435_v15  ;;  %v1443_v33 = vsub.s32 4, %v3820_v22  ;;  %v1439_v51 = vcvt.s32.f32 %v1432_v59  ;;  %vm2604_vm11 = vcmp.lt.s32.totalorder %v2603_v36, 0 }
 0x3cf   :  { %v1626_v18 = vadd.s32 536870912, %v1625_v21  ;;  %v1476_v0 = vsub.s32 32, %v1475_v29  ;;  %v1324_v11 = vsel %vm2604_vm11, 0, %v2603_v36  ;;  %v1478_v50 = vshll.u32 %v2962_v1, %v1475_v29 }
 0x3d0   :  { %v1437_v41 = vand.u32 2147483647, %v1436_v2  ;;  %v1481_v61 = vshll.u32 %v2963_v3, %v1475_v29  ;;  %v1325_v16 = vsub.s32 32, %v1324_v11  ;;  %v1329_v55 = vsub.s32 4294967266, %v1324_v11 }
 0x3d1   :  { %v3898_v4 = vshrl.u32 %v1626_v18, 30  ;;  %v1484_v62 = vshll.u32 %v2964_v6, %v1475_v29  ;;  %vm1493_vm12 = vcmp.lt.s32.totalorder %v3884_v19, 1  ;;  %v1326_v31 = vshll.u32 %v3857_v54, %v1324_v11 }
 0x3d2   :  { %v1440_v52 = vmul.f32 %v1439_v51, %v1437_v41  ;;  %v1479_v49 = vshrl.u32 %v2963_v3, %v1476_v0  ;;  %v1482_v24 = vshrl.u32 %v2964_v6, %v1476_v0  ;;  %v1327_v30 = vshrl.u32 %v1309_v46, %v1325_v16 }
 0x3d3   :  { %v1330_v26 = vadd.s32 127, %v1329_v55  ;;  %v1628_v38 = vshll.u32 %v3898_v4, 30  ;;  %v1485_v58 = vshrl.u32 %v2965_v8, %v1476_v0  ;;  %v1487_v32 = vshll.u32 %v2965_v8, %v1475_v29 }
 0x3d4   :  { %v1441_v42 = vxor.u32 2147483648, %v1440_v52  ;;  %v1480_v13 = vor.u32 %v1479_v49, %v1478_v50  ;;  %v1483_v44 = vor.u32 %v1482_v24, %v1481_v61  ;;  %vm1255_vm13 = vcmp.lt.s32.totalorder %v3721_v60, 0 }
 0x3d5   :  { %v1328_v34 = vor.u32 %v1327_v30, %v1326_v31  ;;  %v1331_v37 = vshll.u32 %v1330_v26, 23  ;;  %v3909_v54 = vsub.s32 %v1625_v21, %v1628_v38  ;;  %v1486_v40 = vor.u32 %v1485_v58, %v1484_v62 }
 0x3d6   :  { %v1442_v45 = vsel %vm1359_vm9, %v1441_v42, %v1440_v52  ;;  %v1488_v14 = vshrl.u32 %v2966_v10, %v1476_v0  ;;  %v1490_v47 = vshll.u32 %v2966_v10, %v1475_v29  ;;  %v1491_v27 = vshrl.u32 %v2967_v17, %v1476_v0 }
 0x3d7   :  { %v1445_v12 = vsel %vm3888_vm10, %v3719_v5, %v1442_v45  ;;  %vm3921_vm15 = vcmp.le.f32.partialorder %v1253_v53, 0.7853982  ;;  %v1332_v63 = vor.u32 4788187, %v1331_v37  ;;  %v1631_v59 = vsub.s32 0, %v3909_v54 }
 0x3d8   :  { %v1477_v15 = vshrl.u32 %v2962_v1, %v1476_v0  ;;  %2900 = vcosq.f32 %v1445_v12  ;;  %v1335_v46 = vcvt.s32.f32 %v1328_v34  ;;  %v1489_v43 = vor.u32 %v1488_v14, %v1487_v32 }
 0x3d9   :  { %v1492_v36 = vor.u32 %v1491_v27, %v1490_v47  ;;  %2902 = vsinq.f32 %v1445_v12  ;;  %v1333_v21 = vand.u32 2147483647, %v1332_v63  ;;  %v2614_v29 = vmin.u32 %v1631_v59, %v3909_v54 }
 0x3da   :  { %vm1496_vm2 = vcmp.lt.s32.totalorder %v3884_v19, 4  ;;  %vm1495_vm3 = vcmp.lt.s32.totalorder %v3884_v19, 3  ;;  %v1501_v2 = vsel %vm1493_vm12, %v1480_v13, %v1483_v44  ;;  %vm1494_vm4 = vcmp.lt.s32.totalorder %v3884_v19, 2 }
 0x3db   :  { %v1498_v53 = vsel %vm1496_vm2, %v1486_v40, 2102212464  ;;  %v1502_v51 = vsel %vm1496_vm2, %v1489_v43, 920167782  ;;  %v1336_v18 = vmul.f32 %v1335_v46, %v1333_v21  ;;  %v1633_v41 = vclz %v2614_v29 }
 0x3dc   :  { %v1503_v0 = vsel %vm1495_vm3, %v1486_v40, %v1502_v51  ;;  %v1497_v11 = vsel %vm1493_vm12, %v1477_v15, %v1480_v13  ;;  %v1505_v61 = vsel %vm1493_vm12, %v1483_v44, %v1486_v40  ;;  %v1506_v16 = vsel %vm1496_vm2, %v1492_v36, 1326507024 }
 0x3dd   :  { %v1504_v50 = vsel %vm1494_vm4, %v1501_v2, %v1503_v0  ;;  %v1337_v55 = vxor.u32 2147483648, %v1336_v18  ;;  %v2615_v62 = vadd.s32 4294967294, %v1633_v41  ;;  %v1499_v52 = vsel %vm1495_vm3, %v1483_v44, %v1498_v53 }
 0x3de   :  { %v1507_v31 = vsel %vm1495_vm3, %v1489_v43, %v1506_v16  ;;  %v3942_v24 = vmul.u32.u64.low %v3892_v7, %v1504_v50  ;;  %v3943_v30 = vmul.u32.u64.high %v3892_v7, %v1504_v50, %v3942_v24  ;;  %v1340_v26 = vsel %vm1255_vm13, %v1339_v20, %v3854_v28 }
 0x3df   :  { %v1508_v49 = vsel %vm1494_vm4, %v1505_v61, %v1507_v31  ;;  %v1338_v38 = vsel %vm1255_vm13, %v1337_v55, %v1336_v18  ;;  %vm2616_vm5 = vcmp.lt.s32.totalorder %v2615_v62, 0  ;;  %v1500_v32 = vsel %vm1494_vm4, %v1497_v11, %v1499_v52 }
 0x3e0   :  { %v3954_v58 = vmul.u32.u64.low %v3892_v7, %v1508_v49  ;;  %v3955_v42 = vmul.u32.u64.high %v3892_v7, %v1508_v49, %v3954_v58  ;;  %v1341_v13 = vsel %vm3921_vm15, %v3721_v60, %v1338_v38  ;;  %v1636_v44 = vsel %vm2616_vm5, 0, %v2615_v62 }
 0x3e1   :  { %v1444_v28 = vsel %vm1359_vm9, %v1443_v33, %v3820_v22  ;;  %2904 = vcosq.f32 %v1341_v13  ;;  %v1641_v20 = vsub.s32 4294967266, %v1636_v44  ;;  %v1342_v34 = vsel %vm3921_vm15, 0, %v1340_v26 }
 0x3e2   :  { %v2901_v37 = vpop.eup %2900  ;;  %2906 = vsinq.f32 %v1341_v13  ;;  %v1519_v40 = vadd.s32 1, %v3943_v30  ;;  %v1446_v45 = vsel %vm3888_vm10, 0, %v1444_v28  ;;  %v1637_v14 = vsub.s32 32, %v1636_v44 }
 0x3e3   :  { %v2903_v19 = vpop.eup %2902  ;;  %v1642_v47 = vadd.s32 127, %v1641_v20  ;;  %v1516_v27 = vmul.u32 %v3892_v7, %v1500_v32  ;;  %vm1518_vm6 = vc.u32 %v3955_v42, %v3942_v24  ;;  %v1346_v33 = vadd.s32 3, %v1342_v34 }
 0x3e4   :  { %v1520_v22 = vsel %vm1518_vm6, %v1519_v40, %v3943_v30  ;;  %v1621_v12 = vadd.s32 %v3862_v9, %v3869_v35  ;;  %v1450_v59 = vadd.s32 3, %v1446_v45  ;;  %v1454_v15 = vxor.u32 2147483648, %v2903_v19 }
 0x3e5   :  { %v1643_v57 = vshll.u32 %v1642_v47, 23  ;;  %v1521_v63 = vadd.s32 %v1520_v22, %v1516_v27  ;;  %v1457_v36 = vxor.u32 2147483648, %v2901_v37  ;;  %v1347_v21 = vand.u32 3, %v1346_v33 }
 0x3e6   :  { %v1639_v56 = vshrl.u32 %v1621_v12, %v1637_v14  ;;  %v1451_v43 = vand.u32 3, %v1450_v59  ;;  %v1638_v7 = vshll.u32 %v3909_v54, %v1636_v44  ;;  %vm1449_vm11 = vweird.f32 %v3719_v5 }
 0x3e7   :  { %v1522_v46 = vadd.s32 536870912, %v1521_v63  ;;  %v1644_v29 = vor.u32 4788187, %v1643_v57  ;;  %vm1352_vm10 = vcmp.eq.s32.totalorder %v1347_v21, 2  ;;  %vm1349_vm12 = vcmp.eq.s32.totalorder %v1347_v21, 0 }
 0x3e8   :  { %vm1453_vm7 = vcmp.eq.s32.totalorder %v1451_v43, 0  ;;  %vm1456_vm8 = vcmp.eq.s32.totalorder %v1451_v43, 2  ;;  %v1640_v18 = vor.u32 %v1639_v56, %v1638_v7  ;;  %vm1452_vm9 = vcmp.lt.s32.totalorder %v1451_v43, 2 }
 0x3e9   :  { %v3979_v53 = vshrl.u32 %v1522_v46, 30  ;;  %v1455_v2 = vsel %vm1453_vm7, %v2901_v37, %v1454_v15  ;;  %v1458_v35 = vsel %vm1456_vm8, %v1457_v36, %v2903_v19  ;;  %v1645_v50 = vand.u32 2147483647, %v1644_v29 }
 0x3ea   :  { %v1459_v11 = vsel %vm1452_vm9, %v1455_v2, %v1458_v35  ;;  %v1647_v62 = vcvt.s32.f32 %v1640_v18  ;;  %vm1348_vm13 = vcmp.lt.s32.totalorder %v1347_v21, 2  ;;  %vm1345_vm15 = vweird.f32 %v3721_v60 }
 0x3eb   :  { %v2905_v51 = vpop.eup %2904  ;;  %v1524_v9 = vshll.u32 %v3979_v53, 30  ;;  %v1460_v16 = vsel %vm1449_vm11, nan, %v1459_v11  ;;  %vm1567_vm3 = vcmp.lt.s32.totalorder %v3729_v48, 0  ;;  %v1517_v60 = vadd.s32 %v3942_v24, %v3955_v42 }
 0x3ec   :  { %v2907_v41 = vpop.eup %2906  ;;  %v1353_v0 = vxor.u32 2147483648, %v2905_v51  ;;  %v1648_v30 = vmul.f32 %v1647_v62, %v1645_v50  ;;  %vm3991_vm4 = vcmp.le.f32.partialorder %v1565_v25, 0.7853982  ;;  %v1651_v22 = vsub.s32 4, %v3898_v4 }
 0x3ed   :  { %v1525_v54 = vsub.s32 %v1521_v63, %v1524_v9  ;;  %v1350_v61 = vxor.u32 2147483648, %v2907_v41  ;;  %v1547_v57 = vsub.s32 4, %v3979_v53  ;;  %vm1463_vm5 = vcmp.lt.s32.totalorder %v3735_v39, 0 }
 0x3ee   :  { %v1354_v55 = vsel %vm1352_vm10, %v1353_v0, %v2907_v41  ;;  %v1649_v5 = vxor.u32 2147483648, %v1648_v30  ;;  %v1652_v25 = vsel %vm1567_vm3, %v1651_v22, %v3898_v4  ;;  %vm1462_vm6 = vcmp.le.f32.partialorder %v1461_v23, 0.7853982 }
 0x3ef   :  { %v1527_v52 = vsub.s32 0, %v1525_v54  ;;  %v1351_v31 = vsel %vm1349_vm12, %v2905_v51, %v1350_v61  ;;  %v1654_v59 = vsel %vm3991_vm4, 0, %v1652_v25  ;;  %v1548_v56 = vsel %vm1463_vm5, %v1547_v57, %v3979_v53 }
 0x3f0   :  { %v1355_v49 = vsel %vm1348_vm13, %v1351_v31, %v1354_v55  ;;  %v1650_v28 = vsel %vm1567_vm3, %v1649_v5, %v1648_v30  ;;  %v1658_v43 = vadd.s32 3, %v1654_v59  ;;  %v1550_v21 = vsel %vm1462_vm6, 0, %v1548_v56  ;;  %v1671_v31 = vld [vmem:[%s4372_s4 + $0x10] sm:$0xff] }
 0x3f1   :  { %v2610_v26 = vmin.u32 %v1527_v52, %v1525_v54  ;;  %v1356_v38 = vsel %vm1345_vm15, nan, %v1355_v49  ;;  %v1653_v14 = vsel %vm3991_vm4, %v3729_v48, %v1650_v28  ;;  %v1554_v29 = vadd.s32 3, %v1550_v21  ;;  %v1670_v52 = vld [vmem:[%s4372_s4 + $0x8] sm:$0xff]  ;;  %v1685_v49 = vpop.permute.xlu1 %1684 }
 0x3f2   :  { %v2770_v58 = vpack.c.bf16 %v1460_v16, %v1356_v38  ;;  %2908 = vcosq.f32 %v1653_v14  ;;  %v1659_v7 = vand.u32 3, %v1658_v43  ;;  %vm1657_vm12 = vweird.f32 %v3729_v48  ;;  %v1672_v48 = vld [vmem:[%s4372_s4 + $0x18] sm:$0xff] }
 0x3f3   :  { %v1529_v13 = vclz %v2610_v26  ;;  %2910 = vsinq.f32 %v1653_v14  ;;  %v1555_v18 = vand.u32 3, %v1554_v29  ;;  %vm1553_vm15 = vweird.f32 %v3735_v39  ;;  %v1680_v26 = vpop.permute.xlu0 %1679 }
 0x3f4   :  { %2771 = vmatprep.subr.bf16.mxu1 %v2770_v58  ;;  %vm1661_vm7 = vcmp.eq.s32.totalorder %v1659_v7, 0  ;;  %vm1664_vm8 = vcmp.eq.s32.totalorder %v1659_v7, 2  ;;  %vm1660_vm9 = vcmp.lt.s32.totalorder %v1659_v7, 2 }
 0x3f5   :  { %v2611_v44 = vadd.s32 4294967294, %v1529_v13  ;;  %2773 = vmatpush3.bf16.msra.mxu1 %v2770_v58  ;;  %vm1560_vm10 = vcmp.eq.s32.totalorder %v1555_v18, 2  ;;  %vm1557_vm11 = vcmp.eq.s32.totalorder %v1555_v18, 0  ;;  %vm1556_vm13 = vcmp.lt.s32.totalorder %v1555_v18, 2 }
 0x3f7   :  { %vm2612_vm2 = vcmp.lt.s32.totalorder %v2611_v44, 0 }
 0x3f8   :  { %v1532_v32 = vsel %vm2612_vm2, 0, %v2611_v44 }
 0x3f9   :  { %v1533_v20 = vsub.s32 32, %v1532_v32  ;;  %v1537_v34 = vsub.s32 4294967266, %v1532_v32  ;;  %v1534_v40 = vshll.u32 %v1525_v54, %v1532_v32  ;;  %v1695_v32 = vpop.permute.xlu1 %1694 }
 0x3fb   :  { %v1535_v45 = vshrl.u32 %v1517_v60, %v1533_v20  ;;  %v1538_v19 = vadd.s32 127, %v1537_v34 }
 0x3fc   :  { %v2909_v36 = vpop.eup %2908 }
 0x3fd   :  { %v1536_v47 = vor.u32 %v1535_v45, %v1534_v40  ;;  %v1539_v27 = vshll.u32 %v1538_v19, 23  ;;  %v2911_v4 = vpop.eup %2910  ;;  %v1665_v51 = vxor.u32 2147483648, %v2909_v36 }
 0x3fe   :  { %v1662_v2 = vxor.u32 2147483648, %v2911_v4 }
 0x3ff   :  { %v1540_v24 = vor.u32 4788187, %v1539_v27  ;;  %v1543_v33 = vcvt.s32.f32 %v1536_v47  ;;  %v1666_v23 = vsel %vm1664_vm8, %v1665_v51, %v2911_v4  ;;  %v1690_v27 = vpop.permute.xlu0 %1689 }
 0x400   :  { %v1663_v9 = vsel %vm1661_vm7, %v2909_v36, %v1662_v2 }
 0x401   :  { %v1541_v42 = vand.u32 2147483647, %v1540_v24  ;;  %v1667_v0 = vsel %vm1660_vm9, %v1663_v9, %v1666_v23 }
 0x402   :  { %v1668_v61 = vsel %vm1657_vm12, nan, %v1667_v0 }
 0x403   :  { %v1544_v12 = vmul.f32 %v1543_v33, %v1541_v42 }
 0x405   :  { %v1545_v63 = vxor.u32 2147483648, %v1544_v12 }
 0x407   :  { %v1546_v15 = vsel %vm1463_vm5, %v1545_v63, %v1544_v12 }
 0x408   :  { %v1549_v46 = vsel %vm1462_vm6, %v3735_v39, %v1546_v15  ;;  %v2968_v39 = vmov 0.0|0.0  }
 0x409   :  { %2912 = vcosq.f32 %v1549_v46  ;;  %2778 = vmatprep.subr.bf16.mxu0 %v2968_v39 }
 0x40a   :  { %2914 = vsinq.f32 %v1549_v46 }
 0x413   :  { %v2913_v35 = vpop.eup %2912 }
 0x414   :  { %v2915_v53 = vpop.eup %2914  ;;  %v1561_v41 = vxor.u32 2147483648, %v2913_v35 }
 0x415   :  { %v1558_v11 = vxor.u32 2147483648, %v2915_v53 }
 0x416   :  { %v1562_v50 = vsel %vm1560_vm10, %v1561_v41, %v2915_v53 }
 0x417   :  { %v1559_v54 = vsel %vm1557_vm11, %v2913_v35, %v1558_v11 }
 0x418   :  { %v1563_v16 = vsel %vm1556_vm13, %v1559_v54, %v1562_v50 }
 0x419   :  { %v1564_v55 = vsel %vm1553_vm15, nan, %v1563_v16 }
 0x41a   :  { %v2774_v62 = vpack.c.bf16 %v1668_v61, %v1564_v55 }
 0x41c   :  { %2775 = vmatprep.subr.bf16.mxu1 %v2774_v62 }
 0x41d   :  { %2777 = vmatpush3.bf16.msra.mxu1 %v2774_v62 }
 0x420   :  { %2728 = vmatmul.mubr.msk.f32.vlgmr.msra.gmra.mrb[8].mxu1 %vm614_vm14, %v1670_v52 }
 0x421   :  { %2730 = vmatprep.mubr.msk.f32.mxu1 %vm614_vm14, %v1671_v31 }
 0x424   :  { %2731 = vmatmul.mubr.msk.f32.gmra.mrb[10].mxu1 %vm614_vm14, %v1672_v48 }
 0x4f3   :  { %v2729_v30 = vpop.f32.mrb[8].mxu1 }
 0x4f4   :  { %v4025_v38 = vadd.f32 %v2729_v30, %v1685_v49  ;;  %v1775_v58 = vpop.f32.mrb[9].mxu1 }
 0x4f5   :  { %v4027_v13 = vadd.f32 %v1775_v58, %v1680_v26 }
 0x4f6   :  { %v1898_v5 = vand.u32 2147483647, %v4025_v38  ;;  %v1901_v44 = vand.u32 2139095040, %v4025_v38 }
 0x4f7   :  { %v1794_v28 = vand.u32 2147483647, %v4027_v13  ;;  %v1797_v60 = vand.u32 2139095040, %v4027_v13  ;;  %v2732_v20 = vpop.f32.mrb[10].mxu1 }
 0x4f8   :  { %v1902_v34 = vshrl.u32 %v1901_v44, 23  ;;  %v1905_v37 = vand.u32 8388607, %v1898_v5  ;;  %v4035_v40 = vadd.f32 %v2732_v20, %v1695_v32  ;;  %v1785_v45 = vpop.f32.mrb[11].mxu1 }
 0x4f9   :  { %v1798_v19 = vshrl.u32 %v1797_v60, 23  ;;  %v1801_v14 = vand.u32 8388607, %v1794_v28  ;;  %v4040_v25 = vadd.f32 %v1785_v45, %v1690_v27 }
 0x4fa   :  { %v2625_v47 = vadd.s32 4294967169, %v1902_v34  ;;  %v2109_v24 = vand.u32 2139095040, %v4035_v40  ;;  %v1906_v42 = vor.u32 8388608, %v1905_v37  ;;  %v2106_v63 = vand.u32 2147483647, %v4035_v40 }
 0x4fb   :  { %v2621_v22 = vadd.s32 4294967169, %v1798_v19  ;;  %v1802_v12 = vor.u32 8388608, %v1801_v14  ;;  %v2002_v4 = vand.u32 2147483647, %v4040_v25 }
 0x4fc   :  { %v1908_v33 = vadd.s32 1, %v2625_v47  ;;  %v2110_v59 = vshrl.u32 %v2109_v24, 23  ;;  %v4044_v21 = vshll.u32 %v1906_v42, 8  ;;  %v4052_v2 = vand.u32 8388607, %v2106_v63 }
 0x4fd   :  { %v1804_v57 = vadd.s32 1, %v2621_v22  ;;  %v4048_v29 = vshll.u32 %v1802_v12, 8 }
 0x4fe   :  { %vm1909_vm2 = vcmp.gt.s32.totalorder %v1908_v33, 0  ;;  %v2633_v56 = vadd.s32 4294967169, %v2110_v59 }
 0x4ff   :  { %v1910_v15 = vsel %vm1909_vm2, %v1908_v33, 0  ;;  %vm1805_vm3 = vcmp.gt.s32.totalorder %v1804_v57, 0  ;;  %vm1900_vm2 = vcmp.lt.s32.totalorder %v4025_v38, 0 }
 0x500   :  { %v1911_v46 = vshrl.u32 %v1910_v15, 5  ;;  %v1912_v43 = vand.u32 31, %v1910_v15  ;;  %v1806_v36 = vsel %vm1805_vm3, %v1804_v57, 0  ;;  %v4055_v23 = vadd.s32 1, %v2633_v56 }
 0x501   :  { %v4046_v7 = vshrl.u32 %v1806_v36, 5  ;;  %v1808_v9 = vand.u32 31, %v1806_v36 }
 0x502   :  { %v1913_v51 = vsub.s32 32, %v1912_v43  ;;  %v1915_v18 = vshll.u32 %v2962_v1, %v1912_v43  ;;  %v1918_v35 = vshll.u32 %v2963_v3, %v1912_v43  ;;  %v1921_v53 = vshll.u32 %v2964_v6, %v1912_v43 }
 0x503   :  { %v1924_v41 = vshll.u32 %v2965_v8, %v1912_v43  ;;  %v1927_v0 = vshll.u32 %v2966_v10, %v1912_v43  ;;  %vm1930_vm4 = vcmp.lt.s32.totalorder %v1911_v46, 1  ;;  %vm1931_vm5 = vcmp.lt.s32.totalorder %v1911_v46, 2 }
 0x504   :  { %v1916_v11 = vshrl.u32 %v2963_v3, %v1913_v51  ;;  %v1919_v50 = vshrl.u32 %v2964_v6, %v1913_v51  ;;  %v1922_v54 = vshrl.u32 %v2965_v8, %v1913_v51  ;;  %v1914_v61 = vshrl.u32 %v2962_v1, %v1913_v51 }
 0x505   :  { %v1925_v16 = vshrl.u32 %v2966_v10, %v1913_v51  ;;  %v1928_v55 = vshrl.u32 %v2967_v17, %v1913_v51  ;;  %v1809_v48 = vsub.s32 32, %v1808_v9  ;;  %vm1932_vm6 = vcmp.lt.s32.totalorder %v1911_v46, 3 }
 0x506   :  { %v1917_v62 = vor.u32 %v1916_v11, %v1915_v18  ;;  %v1920_v52 = vor.u32 %v1919_v50, %v1918_v35  ;;  %v1923_v31 = vor.u32 %v1922_v54, %v1921_v53  ;;  %vm1933_vm7 = vcmp.lt.s32.totalorder %v1911_v46, 4 }
 0x507   :  { %v1926_v49 = vor.u32 %v1925_v16, %v1924_v41  ;;  %v1929_v30 = vor.u32 %v1928_v55, %v1927_v0  ;;  %v1811_v37 = vshll.u32 %v2962_v1, %v1808_v9  ;;  %v1812_v14 = vshrl.u32 %v2963_v3, %v1809_v48 }
 0x508   :  { %v1934_v26 = vsel %vm1930_vm4, %v1914_v61, %v1917_v62  ;;  %v1935_v58 = vsel %vm1933_vm7, %v1923_v31, 2102212464  ;;  %v1938_v44 = vsel %vm1930_vm4, %v1917_v62, %v1920_v52  ;;  %v1942_v32 = vsel %vm1930_vm4, %v1920_v52, %v1923_v31 }
 0x509   :  { %v1936_v60 = vsel %vm1932_vm6, %v1920_v52, %v1935_v58  ;;  %v1939_v20 = vsel %vm1933_vm7, %v1926_v49, 920167782  ;;  %v1943_v34 = vsel %vm1933_vm7, %v1929_v30, 1326507024  ;;  %v1814_v47 = vshll.u32 %v2963_v3, %v1808_v9 }
 0x50a   :  { %v1940_v45 = vsel %vm1932_vm6, %v1923_v31, %v1939_v20  ;;  %v1944_v19 = vsel %vm1932_vm6, %v1926_v49, %v1943_v34  ;;  %v1937_v27 = vsel %vm1931_vm5, %v1934_v26, %v1936_v60  ;;  %v1815_v42 = vshrl.u32 %v2964_v6, %v1809_v48 }
 0x50b   :  { %v1941_v22 = vsel %vm1931_vm5, %v1938_v44, %v1940_v45  ;;  %v1945_v24 = vsel %vm1931_vm5, %v1942_v32, %v1944_v19  ;;  %v1813_v15 = vor.u32 %v1812_v14, %v1811_v37  ;;  %v1817_v43 = vshll.u32 %v2964_v6, %v1808_v9 }
 0x50c   :  { %v4078_v33 = vmul.u32.u64.low %v4044_v21, %v1945_v24  ;;  %v4079_v12 = vmul.u32.u64.high %v4044_v21, %v1945_v24, %v4078_v33  ;;  %v4082_v57 = vmul.u32.u64.low %v4044_v21, %v1941_v22  ;;  %v4083_v59 = vmul.u32.u64.high %v4044_v21, %v1941_v22, %v4082_v57 }
 0x50d   :  { %v1816_v56 = vor.u32 %v1815_v42, %v1814_v47  ;;  %v1818_v36 = vshrl.u32 %v2965_v8, %v1809_v48  ;;  %v1810_v51 = vshrl.u32 %v2962_v1, %v1809_v48  ;;  %v1820_v46 = vshll.u32 %v2965_v8, %v1808_v9 }
 0x50e   :  { %v1821_v18 = vshrl.u32 %v2966_v10, %v1809_v48  ;;  %v1824_v35 = vshrl.u32 %v2967_v17, %v1809_v48  ;;  %v1953_v53 = vmul.u32 %v4044_v21, %v1937_v27  ;;  %v1823_v0 = vshll.u32 %v2966_v10, %v1808_v9 }
 0x50f   :  { %v1819_v41 = vor.u32 %v1818_v36, %v1817_v43  ;;  %vm1826_vm8 = vcmp.lt.s32.totalorder %v4046_v7, 1  ;;  %vm1955_vm9 = vc.u32 %v4079_v12, %v4082_v57  ;;  %v1956_v11 = vadd.s32 1, %v4083_v59 }
 0x510   :  { %v1822_v50 = vor.u32 %v1821_v18, %v1820_v46  ;;  %vm1827_vm10 = vcmp.lt.s32.totalorder %v4046_v7, 2  ;;  %v1825_v54 = vor.u32 %v1824_v35, %v1823_v0  ;;  %vm1828_vm11 = vcmp.lt.s32.totalorder %v4046_v7, 3 }
 0x511   :  { %vm1829_vm12 = vcmp.lt.s32.totalorder %v4046_v7, 4  ;;  %v1834_v61 = vsel %vm1826_vm8, %v1813_v15, %v1816_v56  ;;  %v1957_v21 = vsel %vm1955_vm9, %v1956_v11, %v4083_v59  ;;  %v1838_v9 = vsel %vm1826_vm8, %v1816_v56, %v1819_v41 }
 0x512   :  { %v1831_v16 = vsel %vm1829_vm12, %v1819_v41, 2102212464  ;;  %v1835_v55 = vsel %vm1829_vm12, %v1822_v50, 920167782  ;;  %v1958_v62 = vadd.s32 %v1957_v21, %v1953_v53  ;;  %v1830_v52 = vsel %vm1826_vm8, %v1810_v51, %v1813_v15 }
 0x513   :  { %v1836_v31 = vsel %vm1828_vm11, %v1819_v41, %v1835_v55  ;;  %v1839_v48 = vsel %vm1829_vm12, %v1825_v54, 1326507024  ;;  %v1832_v49 = vsel %vm1828_vm11, %v1816_v56, %v1831_v16  ;;  %vm2117_vm13 = vcmp.gt.s32.totalorder %v4055_v23, 0 }
 0x514   :  { %v1837_v30 = vsel %vm1827_vm10, %v1834_v61, %v1836_v31  ;;  %v1840_v26 = vsel %vm1828_vm11, %v1822_v50, %v1839_v48  ;;  %v1959_v58 = vadd.s32 536870912, %v1958_v62  ;;  %v2114_v37 = vor.u32 8388608, %v4052_v2 }
 0x515   :  { %v1841_v44 = vsel %vm1827_vm10, %v1838_v9, %v1840_v26  ;;  %v4106_v32 = vmul.u32.u64.low %v4048_v29, %v1837_v30  ;;  %v4107_v60 = vmul.u32.u64.high %v4048_v29, %v1837_v30, %v4106_v32  ;;  %v2118_v45 = vsel %vm2117_vm13, %v4055_v23, 0 }
 0x516   :  { %v4111_v20 = vmul.u32.u64.low %v4048_v29, %v1841_v44  ;;  %v4112_v34 = vmul.u32.u64.high %v4048_v29, %v1841_v44, %v4111_v20  ;;  %v1960_v19 = vshrl.u32 %v1959_v58, 30  ;;  %v1833_v14 = vsel %vm1827_vm10, %v1830_v52, %v1832_v49 }
 0x517   :  { %v2120_v47 = vand.u32 31, %v2118_v45  ;;  %v2005_v27 = vand.u32 2139095040, %v4040_v25  ;;  %v1852_v24 = vadd.s32 1, %v4107_v60  ;;  %v1849_v33 = vmul.u32 %v4048_v29, %v1833_v14 }
 0x518   :  { %v1961_v22 = vshll.u32 %v1960_v19, 30  ;;  %vm1851_vm15 = vc.u32 %v4112_v34, %v4106_v32  ;;  %v4125_v2 = vand.u32 8388607, %v2002_v4  ;;  %v4130_v59 = vshll.u32 %v2114_v37, 8 }
 0x519   :  { %v2121_v42 = vsub.s32 32, %v2120_v47  ;;  %v1853_v7 = vsel %vm1851_vm15, %v1852_v24, %v4107_v60  ;;  %v2006_v15 = vshrl.u32 %v2005_v27, 23  ;;  %v2123_v43 = vshll.u32 %v2962_v1, %v2120_v47 }
 0x51a   :  { %v4127_v23 = vsub.s32 %v1958_v62, %v1961_v22  ;;  %v1854_v56 = vadd.s32 %v1853_v7, %v1849_v33  ;;  %v1954_v51 = vadd.s32 %v4082_v57, %v4079_v12  ;;  %v2126_v18 = vshll.u32 %v2963_v3, %v2120_v47 }
 0x51b   :  { %v2124_v29 = vshrl.u32 %v2963_v3, %v2121_v42  ;;  %v2127_v36 = vshrl.u32 %v2964_v6, %v2121_v42  ;;  %v2130_v35 = vshrl.u32 %v2965_v8, %v2121_v42  ;;  %v2119_v41 = vshrl.u32 %v2118_v45, 5 }
 0x51c   :  { %v1964_v46 = vsub.s32 0, %v4127_v23  ;;  %v1855_v53 = vadd.s32 536870912, %v1854_v56  ;;  %v2129_v11 = vshll.u32 %v2964_v6, %v2120_v47  ;;  %v2132_v61 = vshll.u32 %v2965_v8, %v2120_v47 }
 0x51d   :  { %v2125_v0 = vor.u32 %v2124_v29, %v2123_v43  ;;  %v2128_v54 = vor.u32 %v2127_v36, %v2126_v18  ;;  %v2133_v21 = vshrl.u32 %v2966_v10, %v2121_v42  ;;  %v1984_v16 = vsub.s32 4, %v1960_v19 }
 0x51e   :  { %v2626_v50 = vmin.u32 %v1964_v46, %v4127_v23  ;;  %v4144_v12 = vshrl.u32 %v1855_v53, 30  ;;  %v2131_v57 = vor.u32 %v2130_v35, %v2129_v11  ;;  %v2136_v55 = vshrl.u32 %v2967_v17, %v2121_v42 }
 0x51f   :  { %v2122_v62 = vshrl.u32 %v2962_v1, %v2121_v42  ;;  %v2134_v52 = vor.u32 %v2133_v21, %v2132_v61  ;;  %v2135_v31 = vshll.u32 %v2966_v10, %v2120_v47  ;;  %vm2138_vm3 = vcmp.lt.s32.totalorder %v2119_v41, 1 }
 0x520   :  { %v1966_v9 = vclz %v2626_v50  ;;  %v1857_v48 = vshll.u32 %v4144_v12, 30  ;;  %vm2140_vm4 = vcmp.lt.s32.totalorder %v2119_v41, 3  ;;  %vm2141_vm5 = vcmp.lt.s32.totalorder %v2119_v41, 4 }
 0x521   :  { %v2137_v30 = vor.u32 %v2136_v55, %v2135_v31  ;;  %v2146_v26 = vsel %vm2138_vm3, %v2125_v0, %v2128_v54  ;;  %v2147_v58 = vsel %vm2141_vm5, %v2134_v52, 920167782  ;;  %vm2139_vm6 = vcmp.lt.s32.totalorder %v2119_v41, 2 }
 0x522   :  { %v2627_v49 = vadd.s32 4294967294, %v1966_v9  ;;  %v4152_v44 = vsub.s32 %v1854_v56, %v1857_v48  ;;  %v2143_v60 = vsel %vm2141_vm5, %v2131_v57, 2102212464  ;;  %v2148_v20 = vsel %vm2140_vm4, %v2131_v57, %v2147_v58 }
 0x523   :  { %v1985_v37 = vsel %vm1900_vm2, %v1984_v16, %v1960_v19  ;;  %v2149_v45 = vsel %vm2139_vm6, %v2146_v26, %v2148_v20  ;;  %v2629_v14 = vadd.s32 4294967169, %v2006_v15  ;;  %v2142_v22 = vsel %vm2138_vm3, %v2122_v62, %v2125_v0 }
 0x524   :  { %vm2628_vm7 = vcmp.lt.s32.totalorder %v2627_v49, 0  ;;  %v1860_v27 = vsub.s32 0, %v4152_v44  ;;  %v2150_v24 = vsel %vm2138_vm3, %v2128_v54, %v2131_v57  ;;  %v2144_v7 = vsel %vm2140_vm4, %v2128_v54, %v2143_v60 }
 0x525   :  { %v1969_v47 = vsel %vm2628_vm7, 0, %v2627_v49  ;;  %v2151_v56 = vsel %vm2141_vm5, %v2137_v30, 1326507024  ;;  %vm1796_vm8 = vcmp.lt.s32.totalorder %v4027_v13, 0  ;;  %v2012_v50 = vadd.s32 1, %v2629_v14 }
 0x526   :  { %v1970_v42 = vsub.s32 32, %v1969_v47  ;;  %v1974_v33 = vsub.s32 4294967266, %v1969_v47  ;;  %v2622_v19 = vmin.u32 %v1860_v27, %v4152_v44  ;;  %v2152_v43 = vsel %vm2140_vm4, %v2134_v52, %v2151_v56 }
 0x527   :  { %v4168_v15 = vmul.u32.u64.low %v4130_v59, %v2149_v45  ;;  %v4169_v29 = vmul.u32.u64.high %v4130_v59, %v2149_v45, %v4168_v15  ;;  %v1971_v36 = vshll.u32 %v4127_v23, %v1969_v47  ;;  %v2153_v35 = vsel %vm2139_vm6, %v2150_v24, %v2152_v43 }
 0x528   :  { %v1972_v46 = vshrl.u32 %v1954_v51, %v1970_v42  ;;  %v1975_v18 = vadd.s32 127, %v1974_v33  ;;  %v1862_v53 = vclz %v2622_v19  ;;  %vm4180_vm9 = vcmp.le.f32.partialorder %v1898_v5, 0.7853982 }
 0x529   :  { %v4175_v0 = vmul.u32.u64.low %v4130_v59, %v2153_v35  ;;  %v4176_v11 = vmul.u32.u64.high %v4130_v59, %v2153_v35, %v4175_v0  ;;  %v2145_v23 = vsel %vm2139_vm6, %v2142_v22, %v2144_v7  ;;  %v2164_v16 = vadd.s32 1, %v4169_v29 }
 0x52a   :  { %v1973_v61 = vor.u32 %v1972_v46, %v1971_v36  ;;  %v1976_v21 = vshll.u32 %v1975_v18, 23  ;;  %v2623_v51 = vadd.s32 4294967294, %v1862_v53  ;;  %v2010_v57 = vor.u32 8388608, %v4125_v2 }
 0x52b   :  { %vm2013_vm10 = vcmp.gt.s32.totalorder %v2012_v50, 0  ;;  %v1987_v9 = vsel %vm4180_vm9, 0, %v1985_v37  ;;  %v1880_v62 = vsub.s32 4, %v4144_v12  ;;  %v2161_v31 = vmul.u32 %v4130_v59, %v2145_v23 }
 0x52c   :  { %v1977_v55 = vor.u32 4788187, %v1976_v21  ;;  %v2014_v5 = vsel %vm2013_vm10, %v2012_v50, 0  ;;  %v1980_v52 = vcvt.s32.f32 %v1973_v61  ;;  %vm2624_vm11 = vcmp.lt.s32.totalorder %v2623_v51, 0 }
 0x52d   :  { %vm2163_vm12 = vc.u32 %v4176_v11, %v4168_v15  ;;  %v1865_v48 = vsel %vm2624_vm11, 0, %v2623_v51  ;;  %v2016_v2 = vand.u32 31, %v2014_v5  ;;  %v1850_v30 = vadd.s32 %v4106_v32, %v4112_v34 }
 0x52e   :  { %v1978_v41 = vand.u32 2147483647, %v1977_v55  ;;  %v2165_v49 = vsel %vm2163_vm12, %v2164_v16, %v4169_v29  ;;  %v1866_v26 = vsub.s32 32, %v1865_v48  ;;  %v1870_v58 = vsub.s32 4294967266, %v1865_v48 }
 0x52f   :  { %v2166_v60 = vadd.s32 %v2165_v49, %v2161_v31  ;;  %v4196_v37 = vadd.s32 3, %v1987_v9  ;;  %vm4200_vm13 = vcmp.le.f32.partialorder %v1794_v28, 0.7853982  ;;  %v4207_v45 = vsel %vm1796_vm8, %v1880_v62, %v4144_v12 }
 0x530   :  { %v1981_v20 = vmul.f32 %v1980_v52, %v1978_v41  ;;  %v2017_v14 = vsub.s32 32, %v2016_v2  ;;  %v1867_v32 = vshll.u32 %v4152_v44, %v1865_v48  ;;  %v1868_v34 = vshrl.u32 %v1850_v30, %v1866_v26 }
 0x531   :  { %v1871_v47 = vadd.s32 127, %v1870_v58  ;;  %v2167_v27 = vadd.s32 536870912, %v2166_v60  ;;  %v4210_v24 = vshrl.u32 %v2014_v5, 5  ;;  %v2019_v42 = vshll.u32 %v2962_v1, %v2016_v2 }
 0x532   :  { %v1982_v22 = vxor.u32 2147483648, %v1981_v20  ;;  %v2020_v28 = vshrl.u32 %v2963_v3, %v2017_v14  ;;  %v1869_v33 = vor.u32 %v1868_v34, %v1867_v32  ;;  %v2026_v12 = vshrl.u32 %v2965_v8, %v2017_v14 }
 0x533   :  { %v1872_v7 = vshll.u32 %v1871_v47, 23  ;;  %v4214_v56 = vshrl.u32 %v2167_v27, 30  ;;  %v2022_v44 = vshll.u32 %v2963_v3, %v2016_v2  ;;  %v2023_v43 = vshrl.u32 %v2964_v6, %v2017_v14 }
 0x534   :  { %v1983_v19 = vsel %vm1900_vm2, %v1982_v22, %v1981_v20  ;;  %v2025_v29 = vshll.u32 %v2964_v6, %v2016_v2  ;;  %v2021_v35 = vor.u32 %v2020_v28, %v2019_v42  ;;  %v1876_v53 = vcvt.s32.f32 %v1869_v33 }
 0x535   :  { %v1986_v36 = vsel %vm4180_vm9, %v4025_v38, %v1983_v19  ;;  %v1873_v46 = vor.u32 4788187, %v1872_v7  ;;  %v2169_v18 = vshll.u32 %v4214_v56, 30  ;;  %v2028_v0 = vshll.u32 %v2965_v8, %v2016_v2 }
 0x536   :  { %2916 = vcosq.f32 %v1986_v36  ;;  %v2029_v50 = vshrl.u32 %v2966_v10, %v2017_v14  ;;  %v2027_v23 = vor.u32 %v2026_v12, %v2025_v29  ;;  %v2024_v51 = vor.u32 %v2023_v43, %v2022_v44 }
 0x537   :  { %2918 = vsinq.f32 %v1986_v36  ;;  %v1874_v61 = vand.u32 2147483647, %v1873_v46  ;;  %v4228_v21 = vsub.s32 %v2166_v60, %v2169_v18  ;;  %v2031_v54 = vshll.u32 %v2966_v10, %v2016_v2 }
 0x538   :  { %v2030_v16 = vor.u32 %v2029_v50, %v2028_v0  ;;  %v2032_v55 = vshrl.u32 %v2967_v17, %v2017_v14  ;;  %v1883_v62 = vsel %vm4200_vm13, 0, %v4207_v45  ;;  %v2050_v52 = vshll.u32 %v2010_v57, 8 }
 0x539   :  { %v1877_v9 = vmul.f32 %v1876_v53, %v1874_v61  ;;  %v2172_v5 = vsub.s32 0, %v4228_v21  ;;  %v2018_v31 = vshrl.u32 %v2962_v1, %v2017_v14  ;;  %vm2034_vm15 = vcmp.lt.s32.totalorder %v4210_v24, 1 }
 0x53a   :  { %v2033_v41 = vor.u32 %v2032_v55, %v2031_v54  ;;  %vm2037_vm2 = vcmp.lt.s32.totalorder %v4210_v24, 4  ;;  %vm2035_vm3 = vcmp.lt.s32.totalorder %v4210_v24, 2  ;;  %vm2036_vm4 = vcmp.lt.s32.totalorder %v4210_v24, 3 }
 0x53b   :  { %v1878_v48 = vxor.u32 2147483648, %v1877_v9  ;;  %v2634_v49 = vmin.u32 %v2172_v5, %v4228_v21  ;;  %v2039_v2 = vsel %vm2037_vm2, %v2027_v23, 2102212464  ;;  %v2038_v30 = vsel %vm2034_vm15, %v2018_v31, %v2021_v35 }
 0x53c   :  { %v2042_v26 = vsel %vm2034_vm15, %v2021_v35, %v2024_v51  ;;  %v2043_v57 = vsel %vm2037_vm2, %v2030_v16, 920167782  ;;  %v2046_v45 = vsel %vm2034_vm15, %v2024_v51, %v2027_v23  ;;  %v2040_v32 = vsel %vm2036_vm4, %v2024_v51, %v2039_v2 }
 0x53d   :  { %v1879_v58 = vsel %vm1796_vm8, %v1878_v48, %v1877_v9  ;;  %v2174_v60 = vclz %v2634_v49  ;;  %v2044_v20 = vsel %vm2036_vm4, %v2027_v23, %v2043_v57  ;;  %v2047_v47 = vsel %vm2037_vm2, %v2033_v41, 1326507024 }
 0x53e   :  { %v1882_v14 = vsel %vm4200_vm13, %v4027_v13, %v1879_v58  ;;  %v2045_v34 = vsel %vm2035_vm3, %v2042_v26, %v2044_v20  ;;  %v2048_v22 = vsel %vm2036_vm4, %v2030_v16, %v2047_v47  ;;  %v1992_v42 = vand.u32 3, %v4196_v37 }
 0x53f   :  { %2920 = vcosq.f32 %v1882_v14  ;;  %v2635_v27 = vadd.s32 4294967294, %v2174_v60  ;;  %v2049_v33 = vsel %vm2035_vm3, %v2046_v45, %v2048_v22  ;;  %v2041_v19 = vsel %vm2035_vm3, %v2038_v30, %v2040_v32 }
 0x540   :  { %v2917_v28 = vpop.eup %2916  ;;  %2922 = vsinq.f32 %v1882_v14  ;;  %v4258_v7 = vmul.u32.u64.low %v2050_v52, %v2045_v34  ;;  %v4259_v59 = vmul.u32.u64.high %v2050_v52, %v2045_v34, %v4258_v7  ;;  %v1887_v29 = vadd.s32 3, %v1883_v62 }
 0x541   :  { %v2919_v12 = vpop.eup %2918  ;;  %vm2636_vm5 = vcmp.lt.s32.totalorder %v2635_v27, 0  ;;  %v4264_v44 = vmul.u32.u64.low %v2050_v52, %v2049_v33  ;;  %v4265_v43 = vmul.u32.u64.high %v2050_v52, %v2049_v33, %v4264_v44  ;;  %vm1990_vm6 = vweird.f32 %v4025_v38 }
 0x542   :  { %v2177_v36 = vsel %vm2636_vm5, 0, %v2635_v27  ;;  %v1995_v37 = vxor.u32 2147483648, %v2919_v12  ;;  %vm1994_vm7 = vcmp.eq.s32.totalorder %v1992_v42, 0  ;;  %v2057_v18 = vmul.u32 %v2050_v52, %v2041_v19 }
 0x543   :  { %v2182_v46 = vsub.s32 4294967266, %v2177_v36  ;;  %v2060_v35 = vadd.s32 1, %v4259_v59  ;;  %v1998_v0 = vxor.u32 2147483648, %v2917_v28  ;;  %v2178_v50 = vsub.s32 32, %v2177_v36 }
 0x544   :  { %v1996_v53 = vsel %vm1994_vm7, %v2917_v28, %v1995_v37  ;;  %vm2059_vm8 = vc.u32 %v4265_v43, %v4258_v7  ;;  %vm1997_vm9 = vcmp.eq.s32.totalorder %v1992_v42, 2  ;;  %v1888_v23 = vand.u32 3, %v1887_v29 }
 0x545   :  { %v2183_v61 = vadd.s32 127, %v2182_v46  ;;  %v2061_v24 = vsel %vm2059_vm8, %v2060_v35, %v4259_v59  ;;  %vm1993_vm10 = vcmp.lt.s32.totalorder %v1992_v42, 2  ;;  %v1999_v51 = vsel %vm1997_vm9, %v1998_v0, %v2919_v12 }
 0x546   :  { %v2162_v16 = vadd.s32 %v4168_v15, %v4176_v11  ;;  %v2062_v55 = vadd.s32 %v2061_v24, %v2057_v18  ;;  %v2000_v9 = vsel %vm1993_vm10, %v1996_v53, %v1999_v51  ;;  %vm2969_vm11 = vmmov 0  }
 0x547   :  { %v2184_v54 = vshll.u32 %v2183_v61, 23  ;;  %v2001_v62 = vsel %vm1990_vm6, nan, %v2000_v9  ;;  %v2970_v41 = vmov 0.0   ;;  %vm1893_vm12 = vcmp.eq.s32.totalorder %v1888_v23, 2 }
 0x548   :  { %v2180_v52 = vshrl.u32 %v2162_v16, %v2178_v50  ;;  %v2063_v31 = vadd.s32 536870912, %v2062_v55  ;;  %2741 = vmatprep.mubr.msk.f32.mxu0 %vm2969_vm11, %v2970_v41  ;;  %v2179_v2 = vshll.u32 %v4228_v21, %v2177_v36  ;;  %vm1890_vm13 = vcmp.eq.s32.totalorder %v1888_v23, 0 }
 0x549   :  { %v2921_v5 = vpop.eup %2920  ;;  %v2185_v15 = vor.u32 4788187, %v2184_v54  ;;  %vm1889_vm15 = vcmp.lt.s32.totalorder %v1888_v23, 2  ;;  %vm1886_vm2 = vweird.f32 %v4027_v13  ;;  %vm2108_vm4 = vcmp.lt.s32.totalorder %v4035_v40, 0 }
 0x54a   :  { %v2923_v48 = vpop.eup %2922  ;;  %v1894_v49 = vxor.u32 2147483648, %v2921_v5  ;;  %v2064_v11 = vshrl.u32 %v2063_v31, 30  ;;  %v2181_v38 = vor.u32 %v2180_v52, %v2179_v2  ;;  %v2058_v59 = vadd.s32 %v4258_v7, %v4265_v43 }
 0x54b   :  { %v1891_v30 = vxor.u32 2147483648, %v2923_v48  ;;  %v2186_v20 = vand.u32 2147483647, %v2185_v15  ;;  %vm4288_vm5 = vcmp.le.f32.partialorder %v2106_v63, 0.7853982  ;;  %v2192_v35 = vsub.s32 4, %v4214_v56 }
 0x54c   :  { %v1895_v26 = vsel %vm1893_vm12, %v1894_v49, %v2923_v48  ;;  %v2065_v57 = vshll.u32 %v2064_v11, 30  ;;  %v2188_v34 = vcvt.s32.f32 %v2181_v38  ;;  %v2088_v50 = vsub.s32 4, %v2064_v11 }
 0x54d   :  { %v1892_v58 = vsel %vm1890_vm13, %v2921_v5, %v1891_v30  ;;  %v2193_v63 = vsel %vm2108_vm4, %v2192_v35, %v4214_v56  ;;  %vm2004_vm6 = vcmp.lt.s32.totalorder %v4040_v25, 0  ;;  %vm2003_vm7 = vcmp.le.f32.partialorder %v2002_v4, 0.7853982 }
 0x54e   :  { %v1896_v60 = vsel %vm1889_vm15, %v1892_v58, %v1895_v26  ;;  %v2066_v45 = vsub.s32 %v2062_v55, %v2065_v57  ;;  %v2189_v21 = vmul.f32 %v2188_v34, %v2186_v20  ;;  %v2195_v61 = vsel %vm4288_vm5, 0, %v2193_v63 }
 0x54f   :  { %v1897_v14 = vsel %vm1886_vm2, nan, %v1896_v60  ;;  %v2089_v51 = vsel %vm2004_vm6, %v2088_v50, %v2064_v11  ;;  %v2199_v16 = vadd.s32 3, %v2195_v61  ;;  %vm2198_vm15 = vweird.f32 %v4035_v40 }
 0x550   :  { %v2779_v32 = vpack.c.bf16 %v2001_v62, %v1897_v14  ;;  %v2068_v47 = vsub.s32 0, %v2066_v45  ;;  %v2190_v42 = vxor.u32 2147483648, %v2189_v21  ;;  %v2091_v56 = vsel %vm2003_vm7, 0, %v2089_v51  ;;  %v2210_v14 = vld [vmem:[%s4373_s5] sm:$0xff] }
 0x551   :  { %v2200_v62 = vand.u32 3, %v2199_v16  ;;  %v2095_v5 = vadd.s32 3, %v2091_v56 }
 0x552   :  { %2780 = vmatpush3.bf16.msra.mxu0 %v2779_v32  ;;  %v2630_v27 = vmin.u32 %v2068_v47, %v2066_v45  ;;  %v2191_v13 = vsel %vm2108_vm4, %v2190_v42, %v2189_v21  ;;  %v2215_v32 = vpop.permute.xlu0 %2214 }
 0x553   :  { %2781 = vmatprep.subr.bf16.mxu0 %v2968_v39  ;;  %v2194_v37 = vsel %vm4288_vm5, %v4035_v40, %v2191_v13  ;;  %vm2202_vm8 = vcmp.eq.s32.totalorder %v2200_v62, 0  ;;  %vm2205_vm9 = vcmp.eq.s32.totalorder %v2200_v62, 2  ;;  %v2096_v48 = vand.u32 3, %v2095_v5  ;;  %v2936_v40 = vld [vmem:[%s4368_s0] sm:$0xf]  ;;  %s2972_s0 = smov [#allocation2]  }
 0x554   :  { %v2070_v22 = vclz %v2630_v27  ;;  %2924 = vcosq.f32 %v2194_v37  ;;  %vm2201_vm10 = vcmp.lt.s32.totalorder %v2200_v62, 2  ;;  %s2548_s5 = sshll.u32 %s2972_s0, 4  ;;  %s2549_s5 = int_to_ptr.vmem [resolvable:$true] %s2548_s5 }
 0x555   :  { %2926 = vsinq.f32 %v2194_v37  ;;  %vm2101_vm12 = vcmp.eq.s32.totalorder %v2096_v48, 2  ;;  %vm2098_vm13 = vcmp.eq.s32.totalorder %v2096_v48, 0  ;;  %vm2097_vm2 = vcmp.lt.s32.totalorder %v2096_v48, 2  ;;  %s2937_s9 = scalar_lea.vmem %s2549_s5, 16  ;;  %s2941_s10 = scalar_lea.vmem %s2549_s5, 32 }
 0x556   :  { %v2631_v28 = vadd.s32 4294967294, %v2070_v22  ;;  %p2938_p0 = scmp.ne.s32.totalorder %s2549_s5, %s2937_s9  ;;  %p2942_p1 = scmp.lt.s32.totalorder %s2549_s5, %s2549_s5 }
 0x557   :  { %p2943_p2 = scmp.lt.s32.totalorder %s2941_s10, %s2937_s9 }
 0x558   :  { %vm2632_vm3 = vcmp.lt.s32.totalorder %v2631_v28, 0 }
 0x559   :  { %v2073_v33 = vsel %vm2632_vm3, 0, %v2631_v28  ;;  %vm2094_vm3 = vweird.f32 %v4040_v25  ;;  %p2944_p3 = por %p2943_p2, %p2942_p1 }
 0x55a   :  { %v2074_v12 = vsub.s32 32, %v2073_v33  ;;  %v2078_v19 = vsub.s32 4294967266, %v2073_v33  ;;  %v2075_v39 = vshll.u32 %v2066_v45, %v2073_v33 }
 0x55b   :  { %p2945_p4 = pnand %p2944_p3, %p2938_p0 }
 0x55c   :  { %v2076_v29 = vshrl.u32 %v2058_v59, %v2074_v12  ;;  %v2079_v36 = vadd.s32 127, %v2078_v19 }
 0x55e   :  { %v2077_v46 = vor.u32 %v2076_v29, %v2075_v39  ;;  %v2080_v18 = vshll.u32 %v2079_v36, 23  ;;  %v2925_v55 = vpop.eup %2924 }
 0x55f   :  { %v2927_v9 = vpop.eup %2926  ;;  %v2206_v31 = vxor.u32 2147483648, %v2925_v55 }
 0x560   :  { %v2081_v7 = vor.u32 4788187, %v2080_v18  ;;  %v2084_v53 = vcvt.s32.f32 %v2077_v46  ;;  %v2203_v52 = vxor.u32 2147483648, %v2927_v9 }
 0x561   :  { %v2207_v2 = vsel %vm2205_vm9, %v2206_v31, %v2927_v9 }
 0x562   :  { %v2082_v43 = vand.u32 2147483647, %v2081_v7  ;;  %v2204_v49 = vsel %vm2202_vm8, %v2925_v55, %v2203_v52 }
 0x563   :  { %v2208_v30 = vsel %vm2201_vm10, %v2204_v49, %v2207_v2 }
 0x564   :  { %v2085_v0 = vmul.f32 %v2084_v53, %v2082_v43  ;;  %v2209_v58 = vsel %vm2198_vm15, nan, %v2208_v30  ;;  %vm2467_vm15 = vcmask 64512  }
 0x566   :  { %v2086_v24 = vxor.u32 2147483648, %v2085_v0 }
 0x568   :  { %v2087_v23 = vsel %vm2004_vm6, %v2086_v24, %v2085_v0 }
 0x569   :  { %v2090_v54 = vsel %vm2003_vm7, %v4040_v25, %v2087_v23  ;;  %v2971_v25 = vmov 1.0  }
 0x56a   :  { %2928 = vcosq.f32 %v2090_v54 }
 0x56b   :  { %2930 = vsinq.f32 %v2090_v54 }
 0x574   :  { %v2929_v4 = vpop.eup %2928 }
 0x575   :  { %v2931_v15 = vpop.eup %2930  ;;  %v2102_v11 = vxor.u32 2147483648, %v2929_v4 }
 0x576   :  { %v2099_v26 = vxor.u32 2147483648, %v2931_v15 }
 0x577   :  { %v2103_v38 = vsel %vm2101_vm12, %v2102_v11, %v2931_v15 }
 0x578   :  { %v2100_v57 = vsel %vm2098_vm13, %v2929_v4, %v2099_v26 }
 0x579   :  { %v2104_v60 = vsel %vm2097_vm2, %v2100_v57, %v2103_v38 }
 0x57a   :  { %v2105_v20 = vsel %vm2094_vm3, nan, %v2104_v60 }
 0x57b   :  { %v2782_v45 = vpack.c.bf16 %v2209_v58, %v2105_v20 }
 0x57d   :  { %2783 = vmatpush3.bf16.msra.mxu0 %v2782_v45 }
 0x57e   :  { %2744 = vmatprep.subr.mxu0 %v2970_v41 }
 0x580   :  { %2742 = vmatmul.mubr.msk.f32.vlgmr.msra.gmra.mrb[4].mxu0 %vm614_vm14, %v2210_v14 }
 0x581   :  { %2745 = vmatpush3.msk.msra.mxu0 %vm81_vm0, %v2936_v40  ;;  %2746 = vmatprep.mubr.msk.f32.mxu0 %vm2969_vm11, %v2970_v41 }
 0x582   :  { %2749 = vmatprep.subr.mxu0 %v2970_v41 }
 0x584   :  { %2747 = vmatmul.mubr.msk.f32.vlgmr.msra.gmra.mrb[6].mxu0 %vm68_vm1, %v2971_v25 }
 0x585   :  { %2751 = vmatprep.mubr.msk.f32.mxu0 %vm2969_vm11, %v2970_v41 }
 0x653   :  { %v2286_v34 = vpop.f32.mrb[4].mxu0 }
 0x654   :  { %v4323_v47 = vadd.f32 %v2286_v34, %v2215_v32  ;;  %v2743_v21 = vpop.f32.mrb[5].mxu0 }
 0x656   :  { %v2293_v27 = vand.u32 2139095040, %v4323_v47  ;;  %v2290_v33 = vand.u32 2147483647, %v4323_v47  ;;  %vm2292_vm7 = vcmp.lt.s32.totalorder %v4323_v47, 0  ;;  %vm2382_vm13 = vweird.f32 %v4323_v47 }
 0x658   :  { %v2294_v22 = vshrl.u32 %v2293_v27, 23  ;;  %v2297_v12 = vand.u32 8388607, %v2290_v33  ;;  %vm2291_vm8 = vcmp.le.f32.partialorder %v2290_v33, 0.7853982 }
 0x65a   :  { %v2638_v42 = vadd.s32 4294967169, %v2294_v22  ;;  %v2298_v53 = vor.u32 8388608, %v2297_v12 }
 0x65c   :  { %v2300_v28 = vadd.s32 1, %v2638_v42 }
 0x65e   :  { %vm2301_vm0 = vcmp.gt.s32.totalorder %v2300_v28, 0 }
 0x65f   :  { %v2302_v13 = vsel %vm2301_vm0, %v2300_v28, 0 }
 0x660   :  { %v2304_v59 = vand.u32 31, %v2302_v13  ;;  %v2303_v41 = vshrl.u32 %v2302_v13, 5 }
 0x662   :  { %v2305_v19 = vsub.s32 32, %v2304_v59  ;;  %v2307_v44 = vshll.u32 %v2962_v1, %v2304_v59  ;;  %v2310_v39 = vshll.u32 %v2963_v3, %v2304_v59  ;;  %v2313_v37 = vshll.u32 %v2964_v6, %v2304_v59 }
 0x663   :  { %v2316_v18 = vshll.u32 %v2965_v8, %v2304_v59  ;;  %v2319_v7 = vshll.u32 %v2966_v10, %v2304_v59  ;;  %vm2322_vm1 = vcmp.lt.s32.totalorder %v2303_v41, 1  ;;  %vm2325_vm14 = vcmp.lt.s32.totalorder %v2303_v41, 4 }
 0x664   :  { %v2308_v29 = vshrl.u32 %v2963_v3, %v2305_v19  ;;  %v2311_v36 = vshrl.u32 %v2964_v6, %v2305_v19  ;;  %v2314_v46 = vshrl.u32 %v2965_v8, %v2305_v19  ;;  %v2317_v35 = vshrl.u32 %v2966_v10, %v2305_v19 }
 0x665   :  { %v2320_v43 = vshrl.u32 %v2967_v17, %v2305_v19  ;;  %v2306_v51 = vshrl.u32 %v2962_v1, %v2305_v19  ;;  %vm2324_vm11 = vcmp.lt.s32.totalorder %v2303_v41, 3  ;;  %vm2323_vm4 = vcmp.lt.s32.totalorder %v2303_v41, 2 }
 0x666   :  { %v2309_v63 = vor.u32 %v2308_v29, %v2307_v44  ;;  %v2312_v0 = vor.u32 %v2311_v36, %v2310_v39  ;;  %v2315_v50 = vor.u32 %v2314_v46, %v2313_v37  ;;  %v2318_v61 = vor.u32 %v2317_v35, %v2316_v18 }
 0x667   :  { %v2321_v3 = vor.u32 %v2320_v43, %v2319_v7  ;;  %v2338_v17 = vshll.u32 %v2298_v53, 8 }
 0x668   :  { %v2327_v24 = vsel %vm2325_vm14, %v2315_v50, 2102212464  ;;  %v2330_v6 = vsel %vm2322_vm1, %v2309_v63, %v2312_v0  ;;  %v2334_v23 = vsel %vm2322_vm1, %v2312_v0, %v2315_v50  ;;  %v2331_v8 = vsel %vm2325_vm14, %v2318_v61, 920167782 }
 0x669   :  { %v2335_v16 = vsel %vm2325_vm14, %v2321_v3, 1326507024  ;;  %v2332_v10 = vsel %vm2324_vm11, %v2315_v50, %v2331_v8  ;;  %v2326_v55 = vsel %vm2322_vm1, %v2306_v51, %v2309_v63  ;;  %v2328_v9 = vsel %vm2324_vm11, %v2312_v0, %v2327_v24 }
 0x66a   :  { %v2336_v54 = vsel %vm2324_vm11, %v2318_v61, %v2335_v16  ;;  %v2333_v56 = vsel %vm2323_vm4, %v2330_v6, %v2332_v10  ;;  %v2329_v49 = vsel %vm2323_vm4, %v2326_v55, %v2328_v9 }
 0x66b   :  { %v2337_v62 = vsel %vm2323_vm4, %v2334_v23, %v2336_v54  ;;  %v4343_v31 = vmul.u32.u64.low %v2338_v17, %v2333_v56  ;;  %v4344_v48 = vmul.u32.u64.high %v2338_v17, %v2333_v56, %v4343_v31  ;;  %v2345_v2 = vmul.u32 %v2338_v17, %v2329_v49 }
 0x66c   :  { %v4340_v5 = vmul.u32.u64.low %v2338_v17, %v2337_v62  ;;  %v4341_v52 = vmul.u32.u64.high %v2338_v17, %v2337_v62, %v4340_v5 }
 0x66d   :  { %v2348_v1 = vadd.s32 1, %v4344_v48 }
 0x66e   :  { %vm2347_vm5 = vc.u32 %v4341_v52, %v4343_v31  ;;  %v2346_v14 = vadd.s32 %v4343_v31, %v4341_v52 }
 0x66f   :  { %v2349_v4 = vsel %vm2347_vm5, %v2348_v1, %v4344_v48 }
 0x670   :  { %v2350_v15 = vadd.s32 %v2349_v4, %v2345_v2 }
 0x672   :  { %v2351_v11 = vadd.s32 536870912, %v2350_v15 }
 0x674   :  { %v2352_v30 = vshrl.u32 %v2351_v11, 30 }
 0x676   :  { %v2353_v26 = vshll.u32 %v2352_v30, 30  ;;  %v2376_v19 = vsub.s32 4, %v2352_v30 }
 0x678   :  { %v2354_v38 = vsub.s32 %v2350_v15, %v2353_v26  ;;  %v2377_v39 = vsel %vm2292_vm7, %v2376_v19, %v2352_v30 }
 0x679   :  { %v2379_v36 = vsel %vm2291_vm8, 0, %v2377_v39 }
 0x67a   :  { %v2356_v57 = vsub.s32 0, %v2354_v38  ;;  %v2383_v37 = vadd.s32 3, %v2379_v36 }
 0x67c   :  { %v2639_v58 = vmin.u32 %v2356_v57, %v2354_v38  ;;  %v2384_v46 = vand.u32 3, %v2383_v37 }
 0x67e   :  { %v2358_v60 = vclz %v2639_v58  ;;  %vm2389_vm9 = vcmp.eq.s32.totalorder %v2384_v46, 2  ;;  %vm2386_vm10 = vcmp.eq.s32.totalorder %v2384_v46, 0  ;;  %vm2385_vm12 = vcmp.lt.s32.totalorder %v2384_v46, 2 }
 0x680   :  { %v2640_v20 = vadd.s32 4294967294, %v2358_v60 }
 0x682   :  { %vm2641_vm6 = vcmp.lt.s32.totalorder %v2640_v20, 0 }
 0x683   :  { %v2361_v45 = vsel %vm2641_vm6, 0, %v2640_v20 }
 0x684   :  { %v2362_v40 = vsub.s32 32, %v2361_v45  ;;  %v2366_v32 = vsub.s32 4294967266, %v2361_v45  ;;  %v2363_v34 = vshll.u32 %v2354_v38, %v2361_v45 }
 0x686   :  { %v2364_v21 = vshrl.u32 %v2346_v14, %v2362_v40  ;;  %v2367_v27 = vadd.s32 127, %v2366_v32 }
 0x688   :  { %v2365_v22 = vor.u32 %v2364_v21, %v2363_v34  ;;  %v2368_v42 = vshll.u32 %v2367_v27, 23 }
 0x68a   :  { %v2369_v28 = vor.u32 4788187, %v2368_v42  ;;  %v2372_v59 = vcvt.s32.f32 %v2365_v22 }
 0x68c   :  { %v2370_v13 = vand.u32 2147483647, %v2369_v28 }
 0x68e   :  { %v2373_v12 = vmul.f32 %v2372_v59, %v2370_v13 }
 0x690   :  { %v2374_v41 = vxor.u32 2147483648, %v2373_v12 }
 0x692   :  { %v2375_v44 = vsel %vm2292_vm7, %v2374_v41, %v2373_v12 }
 0x693   :  { %v2378_v29 = vsel %vm2291_vm8, %v4323_v47, %v2375_v44 }
 0x694   :  { %2932 = vcosq.f32 %v2378_v29 }
 0x695   :  { %2934 = vsinq.f32 %v2378_v29 }
 0x69e   :  { %v2933_v18 = vpop.eup %2932 }
 0x69f   :  { %v2935_v35 = vpop.eup %2934  ;;  %v2390_v7 = vxor.u32 2147483648, %v2933_v18 }
 0x6a0   :  { %v2387_v43 = vxor.u32 2147483648, %v2935_v35 }
 0x6a1   :  { %v2391_v53 = vsel %vm2389_vm9, %v2390_v7, %v2935_v35 }
 0x6a2   :  { %v2388_v63 = vsel %vm2386_vm10, %v2933_v18, %v2387_v43 }
 0x6a3   :  { %v2392_v33 = vsel %vm2385_vm12, %v2388_v63, %v2391_v53 }
 0x6a4   :  { %v2393_v0 = vsel %vm2382_vm13, nan, %v2392_v33 }
 0x6a5   :  { %2750 = vmatpush3.msra.mxu0 %v2393_v0 }
 0x6a6   :  { %2752 = vmatmul.mubr.msk.f32.vlgmr.msra.gmra.mrb[6].mxu0 %vm2467_vm15, %v2971_v25 }
 0x779   :  { %v2536_v50 = vpop.f32.mrb[6].mxu0 }
 0x77a   :  { %v2540_v61 = vmul.f32 0.058925565, %v2536_v50  ;;  %v2753_v3 = vpop.f32.mrb[7].mxu0 }
 0x77c   :  { %2541 = vst [vmem:[#allocation2] sm:$0x1] %v2540_v61 }
 0x77d   :  { %2948 = shalt.err (!%p2945_p4)
}
 0x77e   :  { %s2949_s20 = scalar_lea.hbm %s4379_s11, 16 }
 0x77f   :  { %p2950_p5 = scmp.ne.s32.totalorder %s4379_s11, %s2949_s20  ;;  %p2953_p6 = scmp.lt.u32.totalorder %s2949_s20, %s4379_s11 }
 0x781   :  { %p2955_p7 = pnand %p2953_p6, %p2950_p5 }
 0x783   :  { %2958 = shalt.err (!%p2955_p7)
}
 0x784   :  { %2551 = dma.vmem_to_hbm [thread:$0]  %s2549_s5, 16, %s4379_s11, [#allocation3]  }
 0x785   :  { %2959 = dma.done.wait [#allocation3], 16  }
 0x786   :  { %2960 = vsyncadd [#allocation3], 4294967280 }
 0x787   :  { %2555 = vsyncpa [#allocation3], 1 }

</bundles_post_ra>
